<compile_context>
chip_gen: v6e
topology: v6e:2x2x1
jax: 0.10.0
libtpu: 0.0.40
codegen_flags: <defaults>
</compile_context>

<pallas_src>
import functools
import math

import jax
import jax.numpy as jnp
from jax.experimental import pallas as pl
from jax.experimental.pallas import tpu as pltpu


# ----------------------------------------------------------------------------
# Kernel 1: row-tiled matmul + bias + ReLU (1x1 convolution on the MXU)
# ----------------------------------------------------------------------------
def _mm_bias_relu_kernel(a_ref, w_ref, b_ref, o_ref, *, relu):
    acc = jnp.dot(a_ref[...], w_ref[...], preferred_element_type=jnp.float32)
    acc = acc + b_ref[...]
    if relu:
        acc = jnp.maximum(acc, 0.0)
    o_ref[...] = acc.astype(o_ref.dtype)


def _pick_bm(m, cap=512):
    """Largest row tile up to `cap`, but always yielding >= 2 grid steps
    (keeps both v7x TensorCores busy); multiple of 8 sublanes."""
    half = pl.cdiv(m, 2)
    bm = pl.cdiv(half, 8) * 8
    return int(max(8, min(cap, bm)))


def matmul_bias_relu(a, w, b, *, relu=True, out_dtype=jnp.float32):
    """(M, K) @ (K, N) + b (+ ReLU).  bf16 MXU inputs, f32 accumulation."""
    m, k = a.shape
    n = w.shape[1]
    bm = _pick_bm(m)
    mp = pl.cdiv(m, bm) * bm

    a = a.astype(jnp.bfloat16)
    if mp != m:
        a = jnp.pad(a, ((0, mp - m), (0, 0)))
    w = w.astype(jnp.bfloat16)
    b = b.astype(jnp.float32).reshape(1, n)

    out = pl.pallas_call(
        functools.partial(_mm_bias_relu_kernel, relu=relu),
        out_shape=jax.ShapeDtypeStruct((mp, n), out_dtype),
        grid=(mp // bm,),
        in_specs=[
            pl.BlockSpec((bm, k), lambda i: (i, 0)),
            pl.BlockSpec((k, n), lambda i: (0, 0)),
            pl.BlockSpec((1, n), lambda i: (0, 0)),
        ],
        out_specs=pl.BlockSpec((bm, n), lambda i: (i, 0)),
        compiler_params=pltpu.CompilerParams(dimension_semantics=("parallel",)),
    )(a, w, b)
    return out[:m] if mp != m else out


# ----------------------------------------------------------------------------
# Kernel 2: ConvTranspose2d((1,4), stride (1,2), pad (0,1)) + ReLU, 2-phase
# ----------------------------------------------------------------------------
def _deconv_row_kernel(x_ref, w_ref, b_ref, o_ref, *, w_in, c_out):
    # x_ref: (1, 1, W+2, Cin) bf16 (zero column on each W edge)
    # even output col 2j   = x_j @ W[...,1] + x_{j-1} @ W[...,3]
    # odd  output col 2j+1 = x_{j+1} @ W[...,0] + x_j @ W[...,2]
    x_prev = x_ref[0, 0, 0:w_in, :]
    x_cur = x_ref[0, 0, 1:w_in + 1, :]
    x_next = x_ref[0, 0, 2:w_in + 2, :]
    b = b_ref[...]
    even = (jnp.dot(x_cur, w_ref[1], preferred_element_type=jnp.float32)
            + jnp.dot(x_prev, w_ref[3], preferred_element_type=jnp.float32) + b)
    odd = (jnp.dot(x_next, w_ref[0], preferred_element_type=jnp.float32)
           + jnp.dot(x_cur, w_ref[2], preferred_element_type=jnp.float32) + b)
    o_ref[0, 0, :, :c_out] = jnp.maximum(even, 0.0).astype(o_ref.dtype)
    o_ref[0, 0, :, c_out:] = jnp.maximum(odd, 0.0).astype(o_ref.dtype)


def deconv_1x4_s2_p1(sq, wt, b):
    """sq: (N, H, W, Cin) NHWC; wt in torch layout (Cin, Cout, 1, 4).
    Returns (N, H, 2W, Cout) bf16 (ReLU applied)."""
    n, h, w, c_in = sq.shape
    c_out = wt.shape[1]
    sqp = jnp.pad(sq.astype(jnp.bfloat16), ((0, 0), (0, 0), (1, 1), (0, 0)))
    w_taps = jnp.transpose(wt[:, :, 0, :], (2, 0, 1)).astype(jnp.bfloat16)  # (4,Cin,Cout)
    b2 = b.astype(jnp.float32).reshape(1, c_out)

    out = pl.pallas_call(
        functools.partial(_deconv_row_kernel, w_in=w, c_out=c_out),
        out_shape=jax.ShapeDtypeStruct((n, h, w, 2 * c_out), jnp.bfloat16),
        grid=(n, h),
        in_specs=[
            pl.BlockSpec((1, 1, w + 2, c_in), lambda i, j: (i, j, 0, 0)),
            pl.BlockSpec((4, c_in, c_out), lambda i, j: (0, 0, 0)),
            pl.BlockSpec((1, c_out), lambda i, j: (0, 0)),
        ],
        out_specs=pl.BlockSpec((1, 1, w, 2 * c_out), lambda i, j: (i, j, 0, 0)),
        compiler_params=pltpu.CompilerParams(
            dimension_semantics=("parallel", "parallel")),
    )(sqp, w_taps, b2)
    # (N,H,W,2*Cout) -> (N,H,2W,Cout): interleaves even/odd columns (free reshape).
    return out.reshape(n, h, 2 * w, c_out)


# ----------------------------------------------------------------------------
# Kernel 3: fused expand  ex1x1 (1x1) + ex3x3 (3x3, pad 1) + ReLU + concat
# ----------------------------------------------------------------------------
def _expand_fused_kernel(d0_ref, d1_ref, d2_ref, w3_ref, w1_ref, b3_ref, b1_ref,
                         o_ref, *, w_out, c_e1, c_e3):
    # d*_ref: rows h, h+1, h+2 of the (H+2, W+2)-padded activation, bf16.
    d_refs = (d0_ref, d1_ref, d2_ref)
    acc3 = jnp.zeros((w_out, c_e3), jnp.float32)
    for i in range(3):                     # in-kernel im2col: 9 shifted views
        for j in range(3):
            a = d_refs[i][0, 0, j:j + w_out, :]
            acc3 = acc3 + jnp.dot(a, w3_ref[i, j],
                                  preferred_element_type=jnp.float32)
    acc3 = acc3 + b3_ref[...]
    center = d1_ref[0, 0, 1:1 + w_out, :]  # the un-shifted row, reused for e1
    acc1 = (jnp.dot(center, w1_ref[...], preferred_element_type=jnp.float32)
            + b1_ref[...])
    o_ref[0, 0, :, :c_e1] = jnp.maximum(acc1, 0.0).astype(o_ref.dtype)
    o_ref[0, 0, :, c_e1:] = jnp.maximum(acc3, 0.0).astype(o_ref.dtype)


def expand_1x1_3x3_fused(d, w1, b1, w3, b3):
    """d: (N, H, Wout, Csq) bf16.  w1: (Ce1, Csq, 1, 1), w3: (Ce3, Csq, 3, 3)
    (torch layout).  Returns concat([relu(conv1x1), relu(conv3x3)], channel)
    as (N, H, Wout, Ce1+Ce3) f32."""
    n, h, w_out, c_sq = d.shape
    c_e1, c_e3 = w1.shape[0], w3.shape[0]
    dp = jnp.pad(d.astype(jnp.bfloat16), ((0, 0), (1, 1), (1, 1), (0, 0)))
    w3m = jnp.transpose(w3, (2, 3, 1, 0)).astype(jnp.bfloat16)        # (3,3,Csq,Ce3)
    w1m = jnp.transpose(w1[:, :, 0, 0], (1, 0)).astype(jnp.bfloat16)  # (Csq,Ce1)
    b1r = b1.astype(jnp.float32).reshape(1, c_e1)
    b3r = b3.astype(jnp.float32).reshape(1, c_e3)

    def row_spec(i):
        return pl.BlockSpec((1, 1, w_out + 2, c_sq),
                            lambda bn, bh, i=i: (bn, bh + i, 0, 0))

    return pl.pallas_call(
        functools.partial(_expand_fused_kernel, w_out=w_out, c_e1=c_e1, c_e3=c_e3),
        out_shape=jax.ShapeDtypeStruct((n, h, w_out, c_e1 + c_e3), jnp.float32),
        grid=(n, h),
        in_specs=[
            row_spec(0), row_spec(1), row_spec(2),
            pl.BlockSpec((3, 3, c_sq, c_e3), lambda bn, bh: (0, 0, 0, 0)),
            pl.BlockSpec((c_sq, c_e1), lambda bn, bh: (0, 0)),
            pl.BlockSpec((1, c_e3), lambda bn, bh: (0, 0)),
            pl.BlockSpec((1, c_e1), lambda bn, bh: (0, 0)),
        ],
        out_specs=pl.BlockSpec((1, 1, w_out, c_e1 + c_e3),
                               lambda bn, bh: (bn, bh, 0, 0)),
        compiler_params=pltpu.CompilerParams(
            dimension_semantics=("parallel", "parallel")),
    )(dp, dp, dp, w3m, w1m, b3r, b1r)


# ----------------------------------------------------------------------------
# FireDeconv forward (NCHW in / NCHW out, matching the PyTorch module)
# ----------------------------------------------------------------------------
def fire_deconv_forward(x_nchw, params):
    n, c_in, h, w = x_nchw.shape
    x = jnp.transpose(x_nchw, (0, 2, 3, 1))                     # NHWC

    w_sq, b_sq = params["sq"]                                   # (Csq, Cin, 1, 1)
    c_sq = w_sq.shape[0]
    sq = matmul_bias_relu(x.reshape(n * h * w, c_in),
                          jnp.transpose(w_sq[:, :, 0, 0], (1, 0)),
                          b_sq, out_dtype=jnp.bfloat16)
    sq = sq.reshape(n, h, w, c_sq)

    w_de, b_de = params["de"]                                   # (Csq, Csq, 1, 4)
    d = deconv_1x4_s2_p1(sq, w_de, b_de)                        # (N, H, 2W, Csq)

    w_e1, b_e1 = params["e1"]                                   # (Ce1, Csq, 1, 1)
    w_e3, b_e3 = params["e3"]                                   # (Ce3, Csq, 3, 3)
    out = expand_1x1_3x3_fused(d, w_e1, b_e1, w_e3, b_e3)       # (N,H,2W,Ce1+Ce3)
    return jnp.transpose(out, (0, 3, 1, 2))                     # NCHW


# ----------------------------------------------------------------------------
# Deterministic parameter init (PyTorch default-ish uniform bounds)
# ----------------------------------------------------------------------------
def init_params(key, c_in, c_sq, c_e1, c_e3):
    keys = iter(jax.random.split(key, 8))

    def conv_p(cout, cin, kh, kw):
        k1, k2 = jax.random.split(next(keys))
        bound = 1.0 / math.sqrt(cin * kh * kw)
        w = jax.random.uniform(k1, (cout, cin, kh, kw), jnp.float32, -bound, bound)
        b = jax.random.uniform(k2, (cout,), jnp.float32, -bound, bound)
        return w, b

    def deconv_p(cin, cout, kh, kw):
        k1, k2 = jax.random.split(next(keys))
        bound = 1.0 / math.sqrt(cout * kh * kw)
        w = jax.random.uniform(k1, (cin, cout, kh, kw), jnp.float32, -bound, bound)
        b = jax.random.uniform(k2, (cout,), jnp.float32, -bound, bound)
        return w, b

    return {
        "sq": conv_p(c_sq, c_in, 1, 1),
        "de": deconv_p(c_sq, c_sq, 1, 4),
        "e1": conv_p(c_e1, c_sq, 1, 1),
        "e3": conv_p(c_e3, c_sq, 3, 3),
    }


if __name__ == "__main__":
    key = jax.random.PRNGKey(0)
    k_x, k_p = jax.random.split(key)

    # Small FireDeconv instance: FireDeconv(64, 32, 64, 64), input (2, 64, 8, 16).
    N, C_IN, H, W = 2, 64, 8, 16
    C_SQ, C_E1, C_E3 = 32, 64, 64

    x = jax.random.normal(k_x, (N, C_IN, H, W), jnp.float32)
    params = init_params(k_p, C_IN, C_SQ, C_E1, C_E3)

    fwd = jax.jit(fire_deconv_forward)
    out = jax.block_until_ready(fwd(x, params))

    assert out.shape == (N, C_E1 + C_E3, H, 2 * W), out.shape
    assert bool(jnp.all(jnp.isfinite(out)))
    print("KERNEL_OK")
</pallas_src>

<mosaic_0001>
module attributes {stable_mosaic.version = 11 : i64} {
  func.func @_mm_bias_relu_kernel(%arg0: i32, %arg1: memref<128x64xbf16, #tpu.memory_space<vmem>>, %arg2: memref<64x32xbf16, #tpu.memory_space<vmem>>, %arg3: memref<1x32xf32, #tpu.memory_space<vmem>>, %arg4: memref<128x32xbf16, #tpu.memory_space<vmem>>) attributes {dimension_semantics = [#tpu.dimension_semantics<parallel>], iteration_bounds = array<i64: 2>, scalar_prefetch = 0 : i64, scratch_operands = 0 : i64, tpu.core_type = #tpu.core_type<tc>, window_params = [{transform_indices = @transform_0, window_bounds = array<i64: 128, 64>}, {pipeline_mode = #tpu.pipeline_mode<synchronous>, transform_indices = @transform_1, window_bounds = array<i64: 64, 32>}, {pipeline_mode = #tpu.pipeline_mode<synchronous>, transform_indices = @transform_2, window_bounds = array<i64: 1, 32>}, {transform_indices = @transform_3, window_bounds = array<i64: 128, 32>}]} {
    %c0 = arith.constant 0 : index
    %c0_0 = arith.constant 0 : index
    %0 = vector.load %arg1[%c0, %c0_0] : memref<128x64xbf16, #tpu.memory_space<vmem>>, vector<128x64xbf16>
    %c0_1 = arith.constant 0 : index
    %c0_2 = arith.constant 0 : index
    %1 = vector.load %arg2[%c0_1, %c0_2] : memref<64x32xbf16, #tpu.memory_space<vmem>>, vector<64x32xbf16>
    %cst = arith.constant dense<0.000000e+00> : vector<128x32xf32>
    %2 = tpu.matmul %0, %1, %cst {dimension_numbers = #tpu.dot_dimension_numbers<[1], [0], [0], [1], [0, 0, 1, 1], [], []>} : vector<128x64xbf16>, vector<64x32xbf16>, vector<128x32xf32> -> vector<128x32xf32>
    %c0_3 = arith.constant 0 : index
    %c0_4 = arith.constant 0 : index
    %3 = vector.load %arg3[%c0_3, %c0_4] : memref<1x32xf32, #tpu.memory_space<vmem>>, vector<1x32xf32>
    %4 = vector.broadcast %3 : vector<1x32xf32> to vector<128x32xf32>
    %5 = arith.addf %2, %4 : vector<128x32xf32>
    %cst_5 = arith.constant 0.000000e+00 : f32
    %6 = vector.broadcast %cst_5 : f32 to vector<128x32xf32>
    %7 = arith.maximumf %5, %6 : vector<128x32xf32>
    %8 = arith.truncf %7 : vector<128x32xf32> to vector<128x32xbf16>
    %c0_6 = arith.constant 0 : index
    %c0_7 = arith.constant 0 : index
    %9 = vector.load %arg4[%c0_6, %c0_7] : memref<128x32xbf16, #tpu.memory_space<vmem>>, vector<128x32xbf16>
    tpu.vector_store %arg4[%c0_6, %c0_7], %8 {strides = array<i32>} : memref<128x32xbf16, #tpu.memory_space<vmem>>, vector<128x32xbf16>,
    return
  }
  func.func @transform_0(%arg0: i32) -> (i32, i32) {
    %c0_i32 = arith.constant 0 : i32
    %c0_i32_0 = arith.constant 0 : i32
    return %arg0, %c0_i32 : i32, i32
  }
  func.func @transform_1(%arg0: i32) -> (i32, i32) {
    %c0_i32 = arith.constant 0 : i32
    %c0_i32_0 = arith.constant 0 : i32
    %c0_i32_1 = arith.constant 0 : i32
    return %c0_i32, %c0_i32_0 : i32, i32
  }
  func.func @transform_2(%arg0: i32) -> (i32, i32) {
    %c0_i32 = arith.constant 0 : i32
    %c0_i32_0 = arith.constant 0 : i32
    %c0_i32_1 = arith.constant 0 : i32
    return %c0_i32, %c0_i32_0 : i32, i32
  }
  func.func @transform_3(%arg0: i32) -> (i32, i32) {
    %c0_i32 = arith.constant 0 : i32
    %c0_i32_0 = arith.constant 0 : i32
    return %arg0, %c0_i32 : i32, i32
  }
}

module attributes {stable_mosaic.version = 11 : i64} {
  func.func @_deconv_row_kernel(%arg0: i32, %arg1: i32, %arg2: memref<1x1x18x32xbf16, #tpu.memory_space<vmem>>, %arg3: memref<4x32x32xbf16, #tpu.memory_space<vmem>>, %arg4: memref<1x32xf32, #tpu.memory_space<vmem>>, %arg5: memref<1x1x16x64xbf16, #tpu.memory_space<vmem>>) attributes {dimension_semantics = [#tpu.dimension_semantics<parallel>, #tpu.dimension_semantics<parallel>], iteration_bounds = array<i64: 2, 8>, scalar_prefetch = 0 : i64, scratch_operands = 0 : i64, tpu.core_type = #tpu.core_type<tc>, window_params = [{transform_indices = @transform_0, window_bounds = array<i64: 1, 1, 18, 32>}, {pipeline_mode = #tpu.pipeline_mode<synchronous>, transform_indices = @transform_1, window_bounds = array<i64: 4, 32, 32>}, {pipeline_mode = #tpu.pipeline_mode<synchronous>, transform_indices = @transform_2, window_bounds = array<i64: 1, 32>}, {transform_indices = @transform_3, window_bounds = array<i64: 1, 1, 16, 64>}]} {
    %c0 = arith.constant 0 : index
    %c0_0 = arith.constant 0 : index
    %c0_1 = arith.constant 0 : index
    %c0_2 = arith.constant 0 : index
    %0 = vector.load %arg2[%c0, %c0_0, %c0_1, %c0_2] : memref<1x1x18x32xbf16, #tpu.memory_space<vmem>>, vector<1x1x16x32xbf16>
    %1 = vector.shape_cast %0 : vector<1x1x16x32xbf16> to vector<16x32xbf16>
    %c0_3 = arith.constant 0 : index
    %c0_4 = arith.constant 0 : index
    %c1 = arith.constant 1 : index
    %c0_5 = arith.constant 0 : index
    %2 = vector.load %arg2[%c0_3, %c0_4, %c1, %c0_5] : memref<1x1x18x32xbf16, #tpu.memory_space<vmem>>, vector<1x1x16x32xbf16>
    %3 = vector.shape_cast %2 : vector<1x1x16x32xbf16> to vector<16x32xbf16>
    %c0_6 = arith.constant 0 : index
    %c0_7 = arith.constant 0 : index
    %c2 = arith.constant 2 : index
    %c0_8 = arith.constant 0 : index
    %4 = vector.load %arg2[%c0_6, %c0_7, %c2, %c0_8] : memref<1x1x18x32xbf16, #tpu.memory_space<vmem>>, vector<1x1x16x32xbf16>
    %5 = vector.shape_cast %4 : vector<1x1x16x32xbf16> to vector<16x32xbf16>
    %c0_9 = arith.constant 0 : index
    %c0_10 = arith.constant 0 : index
    %6 = vector.load %arg4[%c0_9, %c0_10] : memref<1x32xf32, #tpu.memory_space<vmem>>, vector<1x32xf32>
    %c1_11 = arith.constant 1 : index
    %c0_12 = arith.constant 0 : index
    %c0_13 = arith.constant 0 : index
    %7 = vector.load %arg3[%c1_11, %c0_12, %c0_13] : memref<4x32x32xbf16, #tpu.memory_space<vmem>>, vector<1x32x32xbf16>
    %8 = vector.shape_cast %7 : vector<1x32x32xbf16> to vector<32x32xbf16>
    %cst = arith.constant dense<0.000000e+00> : vector<16x32xf32>
    %9 = tpu.matmul %3, %8, %cst {dimension_numbers = #tpu.dot_dimension_numbers<[1], [0], [0], [1], [0, 0, 1, 1], [], []>} : vector<16x32xbf16>, vector<32x32xbf16>, vector<16x32xf32> -> vector<16x32xf32>
    %c3 = arith.constant 3 : index
    %c0_14 = arith.constant 0 : index
    %c0_15 = arith.constant 0 : index
    %10 = vector.load %arg3[%c3, %c0_14, %c0_15] : memref<4x32x32xbf16, #tpu.memory_space<vmem>>, vector<1x32x32xbf16>
    %11 = vector.shape_cast %10 : vector<1x32x32xbf16> to vector<32x32xbf16>
    %cst_16 = arith.constant dense<0.000000e+00> : vector<16x32xf32>
    %12 = tpu.matmul %1, %11, %cst_16 {dimension_numbers = #tpu.dot_dimension_numbers<[1], [0], [0], [1], [0, 0, 1, 1], [], []>} : vector<16x32xbf16>, vector<32x32xbf16>, vector<16x32xf32> -> vector<16x32xf32>
    %13 = arith.addf %9, %12 : vector<16x32xf32>
    %14 = vector.broadcast %6 : vector<1x32xf32> to vector<16x32xf32>
    %15 = arith.addf %13, %14 : vector<16x32xf32>
    %c0_17 = arith.constant 0 : index
    %c0_18 = arith.constant 0 : index
    %c0_19 = arith.constant 0 : index
    %16 = vector.load %arg3[%c0_17, %c0_18, %c0_19] : memref<4x32x32xbf16, #tpu.memory_space<vmem>>, vector<1x32x32xbf16>
    %17 = vector.shape_cast %16 : vector<1x32x32xbf16> to vector<32x32xbf16>
    %cst_20 = arith.constant dense<0.000000e+00> : vector<16x32xf32>
    %18 = tpu.matmul %5, %17, %cst_20 {dimension_numbers = #tpu.dot_dimension_numbers<[1], [0], [0], [1], [0, 0, 1, 1], [], []>} : vector<16x32xbf16>, vector<32x32xbf16>, vector<16x32xf32> -> vector<16x32xf32>
    %c2_21 = arith.constant 2 : index
    %c0_22 = arith.constant 0 : index
    %c0_23 = arith.constant 0 : index
    %19 = vector.load %arg3[%c2_21, %c0_22, %c0_23] : memref<4x32x32xbf16, #tpu.memory_space<vmem>>, vector<1x32x32xbf16>
    %20 = vector.shape_cast %19 : vector<1x32x32xbf16> to vector<32x32xbf16>
    %cst_24 = arith.constant dense<0.000000e+00> : vector<16x32xf32>
    %21 = tpu.matmul %3, %20, %cst_24 {dimension_numbers = #tpu.dot_dimension_numbers<[1], [0], [0], [1], [0, 0, 1, 1], [], []>} : vector<16x32xbf16>, vector<32x32xbf16>, vector<16x32xf32> -> vector<16x32xf32>
    %22 = arith.addf %18, %21 : vector<16x32xf32>
    %23 = vector.broadcast %6 : vector<1x32xf32> to vector<16x32xf32>
    %24 = arith.addf %22, %23 : vector<16x32xf32>
    %cst_25 = arith.constant 0.000000e+00 : f32
    %25 = vector.broadcast %cst_25 : f32 to vector<16x32xf32>
    %26 = arith.maximumf %15, %25 : vector<16x32xf32>
    %27 = arith.truncf %26 : vector<16x32xf32> to vector<16x32xbf16>
    %c0_26 = arith.constant 0 : index
    %c0_27 = arith.constant 0 : index
    %c0_28 = arith.constant 0 : index
    %c0_29 = arith.constant 0 : index
    %28 = vector.load %arg5[%c0_26, %c0_27, %c0_28, %c0_29] : memref<1x1x16x64xbf16, #tpu.memory_space<vmem>>, vector<1x1x16x32xbf16>
    %29 = vector.shape_cast %28 : vector<1x1x16x32xbf16> to vector<16x32xbf16>
    %30 = vector.shape_cast %27 : vector<16x32xbf16> to vector<1x1x16x32xbf16>
    tpu.vector_store %arg5[%c0_26, %c0_27, %c0_28, %c0_29], %30 {strides = array<i32>} : memref<1x1x16x64xbf16, #tpu.memory_space<vmem>>, vector<1x1x16x32xbf16>,
    %cst_30 = arith.constant 0.000000e+00 : f32
    %31 = vector.broadcast %cst_30 : f32 to vector<16x32xf32>
    %32 = arith.maximumf %24, %31 : vector<16x32xf32>
    %33 = arith.truncf %32 : vector<16x32xf32> to vector<16x32xbf16>
    %c0_31 = arith.constant 0 : index
    %c0_32 = arith.constant 0 : index
    %c0_33 = arith.constant 0 : index
    %c32 = arith.constant 32 : index
    %34 = vector.load %arg5[%c0_31, %c0_32, %c0_33, %c32] : memref<1x1x16x64xbf16, #tpu.memory_space<vmem>>, vector<1x1x16x32xbf16>
    %35 = vector.shape_cast %34 : vector<1x1x16x32xbf16> to vector<16x32xbf16>
    %36 = vector.shape_cast %33 : vector<16x32xbf16> to vector<1x1x16x32xbf16>
    tpu.vector_store %arg5[%c0_31, %c0_32, %c0_33, %c32], %36 {strides = array<i32>} : memref<1x1x16x64xbf16, #tpu.memory_space<vmem>>, vector<1x1x16x32xbf16>,
    return
  }
  func.func @transform_0(%arg0: i32, %arg1: i32) -> (i32, i32, i32, i32) {
    %c0_i32 = arith.constant 0 : i32
    %c0_i32_0 = arith.constant 0 : i32
    %c0_i32_1 = arith.constant 0 : i32
    return %arg0, %arg1, %c0_i32, %c0_i32_0 : i32, i32, i32, i32
  }
  func.func @transform_1(%arg0: i32, %arg1: i32) -> (i32, i32, i32) {
    %c0_i32 = arith.constant 0 : i32
    %c0_i32_0 = arith.constant 0 : i32
    %c0_i32_1 = arith.constant 0 : i32
    %c0_i32_2 = arith.constant 0 : i32
    return %c0_i32, %c0_i32_0, %c0_i32_1 : i32, i32, i32
  }
  func.func @transform_2(%arg0: i32, %arg1: i32) -> (i32, i32) {
    %c0_i32 = arith.constant 0 : i32
    %c0_i32_0 = arith.constant 0 : i32
    %c0_i32_1 = arith.constant 0 : i32
    return %c0_i32, %c0_i32_0 : i32, i32
  }
  func.func @transform_3(%arg0: i32, %arg1: i32) -> (i32, i32, i32, i32) {
    %c0_i32 = arith.constant 0 : i32
    %c0_i32_0 = arith.constant 0 : i32
    %c0_i32_1 = arith.constant 0 : i32
    return %arg0, %arg1, %c0_i32, %c0_i32_0 : i32, i32, i32, i32
  }
}

module attributes {stable_mosaic.version = 11 : i64} {
  func.func @_expand_fused_kernel(%arg0: i32, %arg1: i32, %arg2: memref<1x1x34x32xbf16, #tpu.memory_space<vmem>>, %arg3: memref<1x1x34x32xbf16, #tpu.memory_space<vmem>>, %arg4: memref<1x1x34x32xbf16, #tpu.memory_space<vmem>>, %arg5: memref<3x3x32x64xbf16, #tpu.memory_space<vmem>>, %arg6: memref<32x64xbf16, #tpu.memory_space<vmem>>, %arg7: memref<1x64xf32, #tpu.memory_space<vmem>>, %arg8: memref<1x64xf32, #tpu.memory_space<vmem>>, %arg9: memref<1x1x32x128xf32, #tpu.memory_space<vmem>>) attributes {dimension_semantics = [#tpu.dimension_semantics<parallel>, #tpu.dimension_semantics<parallel>], iteration_bounds = array<i64: 2, 8>, scalar_prefetch = 0 : i64, scratch_operands = 0 : i64, tpu.core_type = #tpu.core_type<tc>, window_params = [{transform_indices = @transform_0, window_bounds = array<i64: 1, 1, 34, 32>}, {transform_indices = @transform_1, window_bounds = array<i64: 1, 1, 34, 32>}, {transform_indices = @transform_2, window_bounds = array<i64: 1, 1, 34, 32>}, {pipeline_mode = #tpu.pipeline_mode<synchronous>, transform_indices = @transform_3, window_bounds = array<i64: 3, 3, 32, 64>}, {pipeline_mode = #tpu.pipeline_mode<synchronous>, transform_indices = @transform_4, window_bounds = array<i64: 32, 64>}, {pipeline_mode = #tpu.pipeline_mode<synchronous>, transform_indices = @transform_5, window_bounds = array<i64: 1, 64>}, {pipeline_mode = #tpu.pipeline_mode<synchronous>, transform_indices = @transform_6, window_bounds = array<i64: 1, 64>}, {transform_indices = @transform_7, window_bounds = array<i64: 1, 1, 32, 128>}]} {
    %cst = arith.constant 0.000000e+00 : f32
    %0 = vector.broadcast %cst : f32 to vector<32x64xf32>
    %c0 = arith.constant 0 : index
    %c0_0 = arith.constant 0 : index
    %c0_1 = arith.constant 0 : index
    %c0_2 = arith.constant 0 : index
    %1 = vector.load %arg2[%c0, %c0_0, %c0_1, %c0_2] : memref<1x1x34x32xbf16, #tpu.memory_space<vmem>>, vector<1x1x32x32xbf16>
    %2 = vector.shape_cast %1 : vector<1x1x32x32xbf16> to vector<32x32xbf16>
    %c0_3 = arith.constant 0 : index
    %c0_4 = arith.constant 0 : index
    %c0_5 = arith.constant 0 : index
    %c0_6 = arith.constant 0 : index
    %3 = vector.load %arg5[%c0_3, %c0_4, %c0_5, %c0_6] : memref<3x3x32x64xbf16, #tpu.memory_space<vmem>>, vector<1x1x32x64xbf16>
    %4 = vector.shape_cast %3 : vector<1x1x32x64xbf16> to vector<32x64xbf16>
    %cst_7 = arith.constant dense<0.000000e+00> : vector<32x64xf32>
    %5 = tpu.matmul %2, %4, %cst_7 {dimension_numbers = #tpu.dot_dimension_numbers<[1], [0], [0], [1], [0, 0, 1, 1], [], []>} : vector<32x32xbf16>, vector<32x64xbf16>, vector<32x64xf32> -> vector<32x64xf32>
    %6 = arith.addf %0, %5 : vector<32x64xf32>
    %c0_8 = arith.constant 0 : index
    %c0_9 = arith.constant 0 : index
    %c1 = arith.constant 1 : index
    %c0_10 = arith.constant 0 : index
    %7 = vector.load %arg2[%c0_8, %c0_9, %c1, %c0_10] : memref<1x1x34x32xbf16, #tpu.memory_space<vmem>>, vector<1x1x32x32xbf16>
    %8 = vector.shape_cast %7 : vector<1x1x32x32xbf16> to vector<32x32xbf16>
    %c0_11 = arith.constant 0 : index
    %c1_12 = arith.constant 1 : index
    %c0_13 = arith.constant 0 : index
    %c0_14 = arith.constant 0 : index
    %9 = vector.load %arg5[%c0_11, %c1_12, %c0_13, %c0_14] : memref<3x3x32x64xbf16, #tpu.memory_space<vmem>>, vector<1x1x32x64xbf16>
    %10 = vector.shape_cast %9 : vector<1x1x32x64xbf16> to vector<32x64xbf16>
    %cst_15 = arith.constant dense<0.000000e+00> : vector<32x64xf32>
    %11 = tpu.matmul %8, %10, %cst_15 {dimension_numbers = #tpu.dot_dimension_numbers<[1], [0], [0], [1], [0, 0, 1, 1], [], []>} : vector<32x32xbf16>, vector<32x64xbf16>, vector<32x64xf32> -> vector<32x64xf32>
    %12 = arith.addf %6, %11 : vector<32x64xf32>
    %c0_16 = arith.constant 0 : index
    %c0_17 = arith.constant 0 : index
    %c2 = arith.constant 2 : index
    %c0_18 = arith.constant 0 : index
    %13 = vector.load %arg2[%c0_16, %c0_17, %c2, %c0_18] : memref<1x1x34x32xbf16, #tpu.memory_space<vmem>>, vector<1x1x32x32xbf16>
    %14 = vector.shape_cast %13 : vector<1x1x32x32xbf16> to vector<32x32xbf16>
    %c0_19 = arith.constant 0 : index
    %c2_20 = arith.constant 2 : index
    %c0_21 = arith.constant 0 : index
    %c0_22 = arith.constant 0 : index
    %15 = vector.load %arg5[%c0_19, %c2_20, %c0_21, %c0_22] : memref<3x3x32x64xbf16, #tpu.memory_space<vmem>>, vector<1x1x32x64xbf16>
    %16 = vector.shape_cast %15 : vector<1x1x32x64xbf16> to vector<32x64xbf16>
    %cst_23 = arith.constant dense<0.000000e+00> : vector<32x64xf32>
    %17 = tpu.matmul %14, %16, %cst_23 {dimension_numbers = #tpu.dot_dimension_numbers<[1], [0], [0], [1], [0, 0, 1, 1], [], []>} : vector<32x32xbf16>, vector<32x64xbf16>, vector<32x64xf32> -> vector<32x64xf32>
    %18 = arith.addf %12, %17 : vector<32x64xf32>
    %c0_24 = arith.constant 0 : index
    %c0_25 = arith.constant 0 : index
    %c0_26 = arith.constant 0 : index
    %c0_27 = arith.constant 0 : index
    %19 = vector.load %arg3[%c0_24, %c0_25, %c0_26, %c0_27] : memref<1x1x34x32xbf16, #tpu.memory_space<vmem>>, vector<1x1x32x32xbf16>
    %20 = vector.shape_cast %19 : vector<1x1x32x32xbf16> to vector<32x32xbf16>
    %c1_28 = arith.constant 1 : index
    %c0_29 = arith.constant 0 : index
    %c0_30 = arith.constant 0 : index
    %c0_31 = arith.constant 0 : index
    %21 = vector.load %arg5[%c1_28, %c0_29, %c0_30, %c0_31] : memref<3x3x32x64xbf16, #tpu.memory_space<vmem>>, vector<1x1x32x64xbf16>
    %22 = vector.shape_cast %21 : vector<1x1x32x64xbf16> to vector<32x64xbf16>
    %cst_32 = arith.constant dense<0.000000e+00> : vector<32x64xf32>
    %23 = tpu.matmul %20, %22, %cst_32 {dimension_numbers = #tpu.dot_dimension_numbers<[1], [0], [0], [1], [0, 0, 1, 1], [], []>} : vector<32x32xbf16>, vector<32x64xbf16>, vector<32x64xf32> -> vector<32x64xf32>
    %24 = arith.addf %18, %23 : vector<32x64xf32>
    %c0_33 = arith.constant 0 : index
    %c0_34 = arith.constant 0 : index
    %c1_35 = arith.constant 1 : index
    %c0_36 = arith.constant 0 : index
    %25 = vector.load %arg3[%c0_33, %c0_34, %c1_35, %c0_36] : memref<1x1x34x32xbf16, #tpu.memory_space<vmem>>, vector<1x1x32x32xbf16>
    %26 = vector.shape_cast %25 : vector<1x1x32x32xbf16> to vector<32x32xbf16>
    %c1_37 = arith.constant 1 : index
    %c1_38 = arith.constant 1 : index
    %c0_39 = arith.constant 0 : index
    %c0_40 = arith.constant 0 : index
    %27 = vector.load %arg5[%c1_37, %c1_38, %c0_39, %c0_40] : memref<3x3x32x64xbf16, #tpu.memory_space<vmem>>, vector<1x1x32x64xbf16>
    %28 = vector.shape_cast %27 : vector<1x1x32x64xbf16> to vector<32x64xbf16>
    %cst_41 = arith.constant dense<0.000000e+00> : vector<32x64xf32>
    %29 = tpu.matmul %26, %28, %cst_41 {dimension_numbers = #tpu.dot_dimension_numbers<[1], [0], [0], [1], [0, 0, 1, 1], [], []>} : vector<32x32xbf16>, vector<32x64xbf16>, vector<32x64xf32> -> vector<32x64xf32>
    %30 = arith.addf %24, %29 : vector<32x64xf32>
    %c0_42 = arith.constant 0 : index
    %c0_43 = arith.constant 0 : index
    %c2_44 = arith.constant 2 : index
    %c0_45 = arith.constant 0 : index
    %31 = vector.load %arg3[%c0_42, %c0_43, %c2_44, %c0_45] : memref<1x1x34x32xbf16, #tpu.memory_space<vmem>>, vector<1x1x32x32xbf16>
    %32 = vector.shape_cast %31 : vector<1x1x32x32xbf16> to vector<32x32xbf16>
    %c1_46 = arith.constant 1 : index
    %c2_47 = arith.constant 2 : index
    %c0_48 = arith.constant 0 : index
    %c0_49 = arith.constant 0 : index
    %33 = vector.load %arg5[%c1_46, %c2_47, %c0_48, %c0_49] : memref<3x3x32x64xbf16, #tpu.memory_space<vmem>>, vector<1x1x32x64xbf16>
    %34 = vector.shape_cast %33 : vector<1x1x32x64xbf16> to vector<32x64xbf16>
    %cst_50 = arith.constant dense<0.000000e+00> : vector<32x64xf32>
    %35 = tpu.matmul %32, %34, %cst_50 {dimension_numbers = #tpu.dot_dimension_numbers<[1], [0], [0], [1], [0, 0, 1, 1], [], []>} : vector<32x32xbf16>, vector<32x64xbf16>, vector<32x64xf32> -> vector<32x64xf32>
    %36 = arith.addf %30, %35 : vector<32x64xf32>
    %c0_51 = arith.constant 0 : index
    %c0_52 = arith.constant 0 : index
    %c0_53 = arith.constant 0 : index
    %c0_54 = arith.constant 0 : index
    %37 = vector.load %arg4[%c0_51, %c0_52, %c0_53, %c0_54] : memref<1x1x34x32xbf16, #tpu.memory_space<vmem>>, vector<1x1x32x32xbf16>
    %38 = vector.shape_cast %37 : vector<1x1x32x32xbf16> to vector<32x32xbf16>
    %c2_55 = arith.constant 2 : index
    %c0_56 = arith.constant 0 : index
    %c0_57 = arith.constant 0 : index
    %c0_58 = arith.constant 0 : index
    %39 = vector.load %arg5[%c2_55, %c0_56, %c0_57, %c0_58] : memref<3x3x32x64xbf16, #tpu.memory_space<vmem>>, vector<1x1x32x64xbf16>
    %40 = vector.shape_cast %39 : vector<1x1x32x64xbf16> to vector<32x64xbf16>
    %cst_59 = arith.constant dense<0.000000e+00> : vector<32x64xf32>
    %41 = tpu.matmul %38, %40, %cst_59 {dimension_numbers = #tpu.dot_dimension_numbers<[1], [0], [0], [1], [0, 0, 1, 1], [], []>} : vector<32x32xbf16>, vector<32x64xbf16>, vector<32x64xf32> -> vector<32x64xf32>
    %42 = arith.addf %36, %41 : vector<32x64xf32>
    %c0_60 = arith.constant 0 : index
    %c0_61 = arith.constant 0 : index
    %c1_62 = arith.constant 1 : index
    %c0_63 = arith.constant 0 : index
    %43 = vector.load %arg4[%c0_60, %c0_61, %c1_62, %c0_63] : memref<1x1x34x32xbf16, #tpu.memory_space<vmem>>, vector<1x1x32x32xbf16>
    %44 = vector.shape_cast %43 : vector<1x1x32x32xbf16> to vector<32x32xbf16>
    %c2_64 = arith.constant 2 : index
    %c1_65 = arith.constant 1 : index
    %c0_66 = arith.constant 0 : index
    %c0_67 = arith.constant 0 : index
    %45 = vector.load %arg5[%c2_64, %c1_65, %c0_66, %c0_67] : memref<3x3x32x64xbf16, #tpu.memory_space<vmem>>, vector<1x1x32x64xbf16>
    %46 = vector.shape_cast %45 : vector<1x1x32x64xbf16> to vector<32x64xbf16>
    %cst_68 = arith.constant dense<0.000000e+00> : vector<32x64xf32>
    %47 = tpu.matmul %44, %46, %cst_68 {dimension_numbers = #tpu.dot_dimension_numbers<[1], [0], [0], [1], [0, 0, 1, 1], [], []>} : vector<32x32xbf16>, vector<32x64xbf16>, vector<32x64xf32> -> vector<32x64xf32>
    %48 = arith.addf %42, %47 : vector<32x64xf32>
    %c0_69 = arith.constant 0 : index
    %c0_70 = arith.constant 0 : index
    %c2_71 = arith.constant 2 : index
    %c0_72 = arith.constant 0 : index
    %49 = vector.load %arg4[%c0_69, %c0_70, %c2_71, %c0_72] : memref<1x1x34x32xbf16, #tpu.memory_space<vmem>>, vector<1x1x32x32xbf16>
    %50 = vector.shape_cast %49 : vector<1x1x32x32xbf16> to vector<32x32xbf16>
    %c2_73 = arith.constant 2 : index
    %c2_74 = arith.constant 2 : index
    %c0_75 = arith.constant 0 : index
    %c0_76 = arith.constant 0 : index
    %51 = vector.load %arg5[%c2_73, %c2_74, %c0_75, %c0_76] : memref<3x3x32x64xbf16, #tpu.memory_space<vmem>>, vector<1x1x32x64xbf16>
    %52 = vector.shape_cast %51 : vector<1x1x32x64xbf16> to vector<32x64xbf16>
    %cst_77 = arith.constant dense<0.000000e+00> : vector<32x64xf32>
    %53 = tpu.matmul %50, %52, %cst_77 {dimension_numbers = #tpu.dot_dimension_numbers<[1], [0], [0], [1], [0, 0, 1, 1], [], []>} : vector<32x32xbf16>, vector<32x64xbf16>, vector<32x64xf32> -> vector<32x64xf32>
    %54 = arith.addf %48, %53 : vector<32x64xf32>
    %c0_78 = arith.constant 0 : index
    %c0_79 = arith.constant 0 : index
    %55 = vector.load %arg7[%c0_78, %c0_79] : memref<1x64xf32, #tpu.memory_space<vmem>>, vector<1x64xf32>
    %56 = vector.broadcast %55 : vector<1x64xf32> to vector<32x64xf32>
    %57 = arith.addf %54, %56 : vector<32x64xf32>
    %c0_80 = arith.constant 0 : index
    %c0_81 = arith.constant 0 : index
    %c1_82 = arith.constant 1 : index
    %c0_83 = arith.constant 0 : index
    %58 = vector.load %arg3[%c0_80, %c0_81, %c1_82, %c0_83] : memref<1x1x34x32xbf16, #tpu.memory_space<vmem>>, vector<1x1x32x32xbf16>
    %59 = vector.shape_cast %58 : vector<1x1x32x32xbf16> to vector<32x32xbf16>
    %c0_84 = arith.constant 0 : index
    %c0_85 = arith.constant 0 : index
    %60 = vector.load %arg6[%c0_84, %c0_85] : memref<32x64xbf16, #tpu.memory_space<vmem>>, vector<32x64xbf16>
    %cst_86 = arith.constant dense<0.000000e+00> : vector<32x64xf32>
    %61 = tpu.matmul %59, %60, %cst_86 {dimension_numbers = #tpu.dot_dimension_numbers<[1], [0], [0], [1], [0, 0, 1, 1], [], []>} : vector<32x32xbf16>, vector<32x64xbf16>, vector<32x64xf32> -> vector<32x64xf32>
    %c0_87 = arith.constant 0 : index
    %c0_88 = arith.constant 0 : index
    %62 = vector.load %arg8[%c0_87, %c0_88] : memref<1x64xf32, #tpu.memory_space<vmem>>, vector<1x64xf32>
    %63 = vector.broadcast %62 : vector<1x64xf32> to vector<32x64xf32>
    %64 = arith.addf %61, %63 : vector<32x64xf32>
    %cst_89 = arith.constant 0.000000e+00 : f32
    %65 = vector.broadcast %cst_89 : f32 to vector<32x64xf32>
    %66 = arith.maximumf %64, %65 : vector<32x64xf32>
    %c0_90 = arith.constant 0 : index
    %c0_91 = arith.constant 0 : index
    %c0_92 = arith.constant 0 : index
    %c0_93 = arith.constant 0 : index
    %67 = vector.load %arg9[%c0_90, %c0_91, %c0_92, %c0_93] : memref<1x1x32x128xf32, #tpu.memory_space<vmem>>, vector<1x1x32x64xf32>
    %68 = vector.shape_cast %67 : vector<1x1x32x64xf32> to vector<32x64xf32>
    %69 = vector.shape_cast %66 : vector<32x64xf32> to vector<1x1x32x64xf32>
    tpu.vector_store %arg9[%c0_90, %c0_91, %c0_92, %c0_93], %69 {strides = array<i32>} : memref<1x1x32x128xf32, #tpu.memory_space<vmem>>, vector<1x1x32x64xf32>,
    %cst_94 = arith.constant 0.000000e+00 : f32
    %70 = vector.broadcast %cst_94 : f32 to vector<32x64xf32>
    %71 = arith.maximumf %57, %70 : vector<32x64xf32>
    %c0_95 = arith.constant 0 : index
    %c0_96 = arith.constant 0 : index
    %c0_97 = arith.constant 0 : index
    %c64 = arith.constant 64 : index
    %72 = vector.load %arg9[%c0_95, %c0_96, %c0_97, %c64] : memref<1x1x32x128xf32, #tpu.memory_space<vmem>>, vector<1x1x32x64xf32>
    %73 = vector.shape_cast %72 : vector<1x1x32x64xf32> to vector<32x64xf32>
    %74 = vector.shape_cast %71 : vector<32x64xf32> to vector<1x1x32x64xf32>
    tpu.vector_store %arg9[%c0_95, %c0_96, %c0_97, %c64], %74 {strides = array<i32>} : memref<1x1x32x128xf32, #tpu.memory_space<vmem>>, vector<1x1x32x64xf32>,
    return
  }
  func.func @transform_0(%arg0: i32, %arg1: i32) -> (i32, i32, i32, i32) {
    %c0_i32 = arith.constant 0 : i32
    %0 = arith.addi %arg1, %c0_i32 : i32
    %c0_i32_0 = arith.constant 0 : i32
    %c0_i32_1 = arith.constant 0 : i32
    %c0_i32_2 = arith.constant 0 : i32
    return %arg0, %0, %c0_i32_0, %c0_i32_1 : i32, i32, i32, i32
  }
  func.func @transform_1(%arg0: i32, %arg1: i32) -> (i32, i32, i32, i32) {
    %c1_i32 = arith.constant 1 : i32
    %0 = arith.addi %arg1, %c1_i32 : i32
    %c0_i32 = arith.constant 0 : i32
    %c0_i32_0 = arith.constant 0 : i32
    %c0_i32_1 = arith.constant 0 : i32
    return %arg0, %0, %c0_i32, %c0_i32_0 : i32, i32, i32, i32
  }
  func.func @transform_2(%arg0: i32, %arg1: i32) -> (i32, i32, i32, i32) {
    %c2_i32 = arith.constant 2 : i32
    %0 = arith.addi %arg1, %c2_i32 : i32
    %c0_i32 = arith.constant 0 : i32
    %c0_i32_0 = arith.constant 0 : i32
    %c0_i32_1 = arith.constant 0 : i32
    return %arg0, %0, %c0_i32, %c0_i32_0 : i32, i32, i32, i32
  }
  func.func @transform_3(%arg0: i32, %arg1: i32) -> (i32, i32, i32, i32) {
    %c0_i32 = arith.constant 0 : i32
    %c0_i32_0 = arith.constant 0 : i32
    %c0_i32_1 = arith.constant 0 : i32
    %c0_i32_2 = arith.constant 0 : i32
    %c0_i32_3 = arith.constant 0 : i32
    return %c0_i32, %c0_i32_0, %c0_i32_1, %c0_i32_2 : i32, i32, i32, i32
  }
  func.func @transform_4(%arg0: i32, %arg1: i32) -> (i32, i32) {
    %c0_i32 = arith.constant 0 : i32
    %c0_i32_0 = arith.constant 0 : i32
    %c0_i32_1 = arith.constant 0 : i32
    return %c0_i32, %c0_i32_0 : i32, i32
  }
  func.func @transform_5(%arg0: i32, %arg1: i32) -> (i32, i32) {
    %c0_i32 = arith.constant 0 : i32
    %c0_i32_0 = arith.constant 0 : i32
    %c0_i32_1 = arith.constant 0 : i32
    return %c0_i32, %c0_i32_0 : i32, i32
  }
  func.func @transform_6(%arg0: i32, %arg1: i32) -> (i32, i32) {
    %c0_i32 = arith.constant 0 : i32
    %c0_i32_0 = arith.constant 0 : i32
    %c0_i32_1 = arith.constant 0 : i32
    return %c0_i32, %c0_i32_0 : i32, i32
  }
  func.func @transform_7(%arg0: i32, %arg1: i32) -> (i32, i32, i32, i32) {
    %c0_i32 = arith.constant 0 : i32
    %c0_i32_0 = arith.constant 0 : i32
    %c0_i32_1 = arith.constant 0 : i32
    return %arg0, %arg1, %c0_i32, %c0_i32_0 : i32, i32, i32, i32
  }
}

</mosaic_0001>

<bundles_post_ra>
// kernel: fire_deconv_forward.3
= control target key start
LH: loop header
LB: loop body
LE: loop exit
PB: predicated region body
PF: predicated region fallthrough
CT: control target
= control target key end

     0   :  { %s701_s12 = smov 0   ;;  %s800_s0 = inlined_call_operand.vmem [shape: bf16[256,64], index: 0, kind: input, shape index: {}]   ;;  %s801_s1 = inlined_call_operand.vmem [shape: bf16[64,32], index: 1, kind: input, shape index: {}]   ;;  %s802_s2 = inlined_call_operand.vmem [shape: f32[1,32], index: 2, kind: input, shape index: {}]   ;;  %s803_s3 = inlined_call_operand.vmem [shape: bf16[256,32], index: 3, kind: output, shape index: {}]  }
   0x1 LB: > { %s545_s13 = sadd.s32 4294967295, %s679_s12   ;;  %p549_p0 = scmp.ge.s32.totalorder %s679_s12, 1  ;;  %s679_s12 = sphi %s701_s12, %s13_s12  }
   0x2   : > { %p138_p1 = scmp.lt.s32.totalorder %s679_s12, 3 }
   0x4   : > { %p139_p2 = pnand %p549_p0, %p138_p1 }
   0x5   : > { %s550_s16 = sshll.u32 (!%p139_p2), %s545_s13, 4 }
   0x6   : > { %142 = sbr.rel (%p139_p2) target bundleno = 242 (0xf2), region = 32  ;;  %p163_p3 = scmp.lt.s32.totalorder (!%p139_p2), %s550_s16, 31 }
   0xb   : > { %v661_v0 = vld [vmem:[%s801_s1 + $0x18] sm:$0xff]   ;;  %v662_v1 = vld [vmem:[%s801_s1 + $0x10] sm:$0xff]   ;;  %s805_s16 = smov (!%p163_p3, %s550_s16), 31  ;;  %v663_v2 = vld [vmem:[%s801_s1 + $0x8] sm:$0xff]   ;;  %vm270_vm0 = vcmask 523264   ;;  %vm472_vm1 = vcmask 257024  }
   0xc   : > { %621 = vmatprep.subr.bf16.mxu0 %v661_v0  ;;  %645 = vmatprep.subr.bf16.mxu1 %v661_v0  ;;  %s551_s21 = sshll.u32 %s805_s16, 2  ;;  %v664_v3 = vld [vmem:[%s801_s1] sm:$0xff]  }
   0xd   : > { %622 = vmatpush3.bf16.msra.mxu0 %v661_v0  ;;  %649 = vmatpush3.bf16.msra.mxu1 %v661_v0  ;;  %s166_s26 = scalar_lea.vmem %s800_s0, %s551_s21  ;;  %v740_v12 = vld [vmem:[%s802_s2] ss:$0 sm:$0xff]  ;;  %s751_s4 = scalar_lea.vmem %s803_s3, %s551_s21 }
   0xe   : > { %623 = vmatprep.subr.bf16.mxu0 %v662_v1  ;;  %646 = vmatprep.subr.bf16.mxu1 %v662_v1  ;;  %v665_v4 = vld [vmem:[%s166_s26] sm:$0xff]   ;;  %v667_v6 = vld [vmem:[%s166_s26 + $0x8] sm:$0xff]   ;;  %v669_v8 = vld [vmem:[%s166_s26 + $0x10] sm:$0xff]  }
   0xf   : > { %v666_v5 = vld [vmem:[%s166_s26 + $0x20] sm:$0xff]   ;;  %629 = vmatprep.mubr.msk.bf16.mxu0 %vm270_vm0, %v665_v4  ;;  %v668_v7 = vld [vmem:[%s166_s26 + $0x28] sm:$0xff]   ;;  %v670_v9 = vld [vmem:[%s166_s26 + $0x30] sm:$0xff]  }
  0x10   : > { %637 = vmatprep.mubr.msk.bf16.mxu1 %vm270_vm0, %v666_v5  ;;  %v671_v10 = vld [vmem:[%s166_s26 + $0x18] sm:$0xff]  }
  0x11   : > { %624 = vmatpush3.bf16.msra.mxu0 %v662_v1  ;;  %650 = vmatpush3.bf16.msra.mxu1 %v662_v1  ;;  %v672_v11 = vld [vmem:[%s166_s26 + $0x38] sm:$0xff]  }
  0x12   : > { %625 = vmatprep.subr.bf16.mxu0 %v663_v2  ;;  %647 = vmatprep.subr.bf16.mxu1 %v663_v2 }
  0x15   : > { %626 = vmatpush3.bf16.msra.mxu0 %v663_v2  ;;  %651 = vmatpush3.bf16.msra.mxu1 %v663_v2 }
  0x16   : > { %627 = vmatprep.subr.bf16.mxu0 %v664_v3  ;;  %648 = vmatprep.subr.bf16.mxu1 %v664_v3 }
  0x19   : > { %628 = vmatpush3.bf16.msra.mxu0 %v664_v3  ;;  %652 = vmatpush3.bf16.msra.mxu1 %v664_v3 }
  0x1c   : > { %630 = vmatmul.mubr.msk.bf16.vlgmr.msra.gmra.mxu0 %vm270_vm0, %v667_v6  ;;  %638 = vmatmul.mubr.msk.bf16.vlgmr.msra.gmra.mxu1 %vm270_vm0, %v668_v7 }
  0x1d   : > { %633 = vmatprep.mubr.msk.bf16.mxu0 %vm270_vm0, %v669_v8  ;;  %641 = vmatprep.mubr.msk.bf16.mxu1 %vm270_vm0, %v670_v9 }
  0x24   : > { %634 = vmatmul.mubr.msk.bf16.gmra.mxu0 %vm270_vm0, %v671_v10  ;;  %642 = vmatmul.mubr.msk.bf16.gmra.mxu1 %vm270_vm0, %v672_v11 }
  0xdc   : > { %v631_v13 = vpop.f32.mrf.mxu0  ;;  %v639_v14 = vpop.f32.mrf.mxu1 }
  0xdd   : > { %v338_v15 = vadd.f32 %v631_v13, %v740_v12  ;;  %v370_v16 = vadd.f32 %v639_v14, %v740_v12 }
  0xde   : > { %v329_v17 = vpop.f32.mrf.mxu0  ;;  %v361_v18 = vpop.f32.mrf.mxu1 }
  0xdf   : > { %v394_v19 = vmax.f32 %v338_v15, 0.0  ;;  %v402_v20 = vmax.f32 %v370_v16, 0.0  ;;  %v330_v21 = vadd.f32 %v740_v12, %v329_v17  ;;  %v362_v22 = vadd.f32 %v740_v12, %v361_v18 }
  0xe0   : > { %v632_v23 = vpop.f32.mrf.mxu0  ;;  %v640_v24 = vpop.f32.mrf.mxu1 }
  0xe1   : > { %v595_v25 = vpack.c.bf16 %v394_v19, %v394_v19  ;;  %v603_v26 = vpack.c.bf16 %v402_v20, %v402_v20  ;;  %v392_v27 = vmax.f32 %v330_v21, 0.0  ;;  %v400_v28 = vmax.f32 %v362_v22, 0.0 }
  0xe2   : > { %v341_v29 = vadd.f32 %v632_v23, %v740_v12  ;;  %v373_v30 = vadd.f32 %v640_v24, %v740_v12  ;;  %v332_v31 = vpop.f32.mrf.mxu0  ;;  %v364_v32 = vpop.f32.mrf.mxu1 }
  0xe3   : > { %475 = vst.msk [vmem:[%s751_s4 + $0x8] sm:$0xf] %vm472_vm1, %v595_v25  ;;  %483 = vst.msk [vmem:[%s751_s4 + $0x28] sm:$0xf] %vm472_vm1, %v603_v26  ;;  %v593_v33 = vpack.c.bf16 %v392_v27, %v392_v27  ;;  %v601_v34 = vpack.c.bf16 %v400_v28, %v400_v28  ;;  %v333_v35 = vadd.f32 %v740_v12, %v332_v31 }
  0xe4   : > { %v365_v36 = vadd.f32 %v740_v12, %v364_v32  ;;  %v395_v37 = vmax.f32 %v341_v29, 0.0  ;;  %v403_v38 = vmax.f32 %v373_v30, 0.0  ;;  %v635_v39 = vpop.f32.mrf.mxu0  ;;  %v643_v40 = vpop.f32.mrf.mxu1 }
  0xe5   : > { %473 = vst.msk [vmem:[%s751_s4] sm:$0xf] %vm472_vm1, %v593_v33  ;;  %481 = vst.msk [vmem:[%s751_s4 + $0x20] sm:$0xf] %vm472_vm1, %v601_v34  ;;  %v393_v41 = vmax.f32 %v333_v35, 0.0  ;;  %v354_v43 = vadd.f32 %v635_v39, %v740_v12  ;;  %v386_v44 = vadd.f32 %v643_v40, %v740_v12 }
  0xe6   : > { %v401_v42 = vmax.f32 %v365_v36, 0.0  ;;  %v596_v45 = vpack.c.bf16 %v395_v37, %v395_v37  ;;  %v604_v46 = vpack.c.bf16 %v403_v38, %v403_v38  ;;  %v345_v47 = vpop.f32.mrf.mxu0  ;;  %v377_v48 = vpop.f32.mrf.mxu1 }
  0xe7   : > { %v594_v49 = vpack.c.bf16 %v393_v41, %v393_v41  ;;  %v398_v51 = vmax.f32 %v354_v43, 0.0  ;;  %v406_v52 = vmax.f32 %v386_v44, 0.0  ;;  %v346_v53 = vadd.f32 %v740_v12, %v345_v47 }
  0xe8   : > { %v602_v50 = vpack.c.bf16 %v401_v42, %v401_v42  ;;  %476 = vst.msk [vmem:[%s751_s4 + $0xc] sm:$0xf] %vm472_vm1, %v596_v45  ;;  %484 = vst.msk [vmem:[%s751_s4 + $0x2c] sm:$0xf] %vm472_vm1, %v604_v46  ;;  %v378_v54 = vadd.f32 %v740_v12, %v377_v48  ;;  %v636_v55 = vpop.f32.mrf.mxu0  ;;  %v644_v56 = vpop.f32.mrf.mxu1 }
  0xe9   : > { %474 = vst.msk [vmem:[%s751_s4 + $0x4] sm:$0xf] %vm472_vm1, %v594_v49  ;;  %v599_v57 = vpack.c.bf16 %v398_v51, %v398_v51  ;;  %v607_v58 = vpack.c.bf16 %v406_v52, %v406_v52  ;;  %v357_v59 = vadd.f32 %v636_v55, %v740_v12  ;;  %v389_v60 = vadd.f32 %v644_v56, %v740_v12 }
  0xea   : > { %482 = vst.msk [vmem:[%s751_s4 + $0x24] sm:$0xf] %vm472_vm1, %v602_v50  ;;  %v396_v61 = vmax.f32 %v346_v53, 0.0  ;;  %v404_v62 = vmax.f32 %v378_v54, 0.0  ;;  %v348_v63 = vpop.f32.mrf.mxu0  ;;  %v380_v0 = vpop.f32.mrf.mxu1 }
  0xeb   : > { %479 = vst.msk [vmem:[%s751_s4 + $0x18] sm:$0xf] %vm472_vm1, %v599_v57  ;;  %487 = vst.msk [vmem:[%s751_s4 + $0x38] sm:$0xf] %vm472_vm1, %v607_v58  ;;  %v399_v1 = vmax.f32 %v357_v59, 0.0  ;;  %v407_v2 = vmax.f32 %v389_v60, 0.0  ;;  %v349_v3 = vadd.f32 %v740_v12, %v348_v63  ;;  %v381_v4 = vadd.f32 %v740_v12, %v380_v0 }
  0xec   : > { %v597_v5 = vpack.c.bf16 %v396_v61, %v396_v61  ;;  %v605_v6 = vpack.c.bf16 %v404_v62, %v404_v62 }
  0xed   : > { %v600_v7 = vpack.c.bf16 %v399_v1, %v399_v1  ;;  %v608_v8 = vpack.c.bf16 %v407_v2, %v407_v2  ;;  %v397_v9 = vmax.f32 %v349_v3, 0.0  ;;  %v405_v10 = vmax.f32 %v381_v4, 0.0 }
  0xee   : > { %477 = vst.msk [vmem:[%s751_s4 + $0x10] sm:$0xf] %vm472_vm1, %v597_v5  ;;  %485 = vst.msk [vmem:[%s751_s4 + $0x30] sm:$0xf] %vm472_vm1, %v605_v6 }
  0xef   : > { %480 = vst.msk [vmem:[%s751_s4 + $0x1c] sm:$0xf] %vm472_vm1, %v600_v7  ;;  %488 = vst.msk [vmem:[%s751_s4 + $0x3c] sm:$0xf] %vm472_vm1, %v608_v8  ;;  %v598_v11 = vpack.c.bf16 %v397_v9, %v397_v9  ;;  %v606_v13 = vpack.c.bf16 %v405_v10, %v405_v10 }
  0xf1   : > { %478 = vst.msk [vmem:[%s751_s4 + $0x14] sm:$0xf] %vm472_vm1, %v598_v11  ;;  %486 = vst.msk [vmem:[%s751_s4 + $0x34] sm:$0xf] %vm472_vm1, %v606_v13 }
  0xf2 PF: > { %s13_s12 = sadd.s32 1, %s679_s12  }
  0xf3   : > { %p10_p4 = scmp.ge.s32.totalorder %s13_s12, 4  }
  0xf5   :  { %12 = sbr.rel (!%p10_p4) target bundleno = 1 (0x1), region = 62 }

// kernel: fire_deconv_forward.4
= control target key start
LH: loop header
LB: loop body
LE: loop exit
PB: predicated region body
PF: predicated region fallthrough
CT: control target
= control target key end

     0   :  { %s826_s12 = smov 0   ;;  %s828_s13 = smov 0   ;;  %s924_s0 = inlined_call_operand.vmem [shape: bf16[2,8,18,32], index: 0, kind: input, shape index: {}]   ;;  %s925_s1 = inlined_call_operand.vmem [shape: bf16[4,32,32], index: 1, kind: input, shape index: {}]   ;;  %s926_s2 = inlined_call_operand.vmem [shape: f32[1,32], index: 2, kind: input, shape index: {}]   ;;  %s927_s3 = inlined_call_operand.vmem [shape: bf16[2,8,16,64], index: 3, kind: output, shape index: {}]  }
   0x1   :  { %s830_s14 = smov 0   ;;  %s832_s15 = smov 0  }
   0x2   :  { %s834_s16 = smov 0  }
   0x3 LB: > { %s22_s17 = sadd.s32 1, %s793_s14  ;;  %s25_s18 = sadd.s32 1, %s797_s15  ;;  %s801_s16 = sphi %s834_s16, %s13_s16   ;;  %s797_s15 = sphi %s832_s15, %s931_s15   ;;  %s793_s14 = sphi %s830_s14, %s930_s14   ;;  %s789_s13 = sphi %s828_s13, %s929_s13   ;;  %s785_s12 = sphi %s826_s12, %s928_s12  }
   0x4   : > { %p23_p0 = scmp.ge.s32.totalorder %s22_s17, 8  ;;  %p620_p1 = scmp.ge.s32.totalorder %s801_s16, 1 }
   0x5   : > { %p157_p2 = scmp.lt.s32.totalorder %s801_s16, 17 }
   0x6   : > { %s933_s17 = smov (%p23_p0, %s22_s17), 0  ;;  %s935_s18 = smov (!%p23_p0, %s25_s18), %s797_s15 }
   0x7   : > { %p158_p3 = pnand %p620_p1, %p157_p2  ;;  %p27_p4 = scmp.ge.s32.totalorder %s935_s18, 2 }
   0x8   : > { %p189_p5 = scmp.lt.s32.totalorder (!%p158_p3), %s789_s13, 1  ;;  %p191_p6 = scmp.lt.s32.totalorder (!%p158_p3), %s785_s12, 7 }
   0x9   : > { %s937_s18 = smov (%p27_p4, %s935_s18), 0  ;;  %161 = sbr.rel (%p158_p3) target bundleno = 360 (0x168), region = 32 }
   0xe   : > { %v752_v0 = vld [vmem:[%s925_s1 + $0x38] sm:$0xff]   ;;  %v803_v1 = vmov 0.0   ;;  %v753_v2 = vld [vmem:[%s925_s1 + $0x30] sm:$0xff]   ;;  %vm804_vm0 = vmmov 0   ;;  %s939_s13 = smov (!%p189_p5, %s789_s13), 1  ;;  %s941_s12 = smov (!%p191_p6, %s785_s12), 7 }
   0xf   : > { %675 = vmatprep.subr.bf16.mxu0 %v803_v1  ;;  %683 = vmatprep.subr.bf16.mxu1 %v803_v1  ;;  %v754_v3 = vld [vmem:[%s925_s1 + $0x18] sm:$0xff]   ;;  %v758_v4 = vld [vmem:[%s925_s1 + $0x10] sm:$0xff]   ;;  %s708_s27 = smul.u32 24, %s939_s13  ;;  %vm240_vm1 = vcmask 261120   ;;  %v757_v7 = vld [vmem:[%s925_s1 + $0x28] sm:$0xff]   ;;  %vm429_vm3 = vcmask 1046528  }
  0x10   : > { %676 = vmatpush3.bf16.msra.mxu0 %v752_v0  ;;  %679 = vmatprep.mubr.msk.bf16.mxu0 %vm804_vm0, %v803_v1  ;;  %s707_s28 = smul.u32 3, %s941_s12  ;;  %v759_v14 = vld [vmem:[%s925_s1 + $0x20] sm:$0xff]   ;;  %vm288_vm2 = vsmask.f32 7424  ;;  %v761_v19 = vld [vmem:[%s925_s1 + $0x8] sm:$0xff]   ;;  %s622_s22 = sshll.u32 %s941_s12, 1 }
  0x11   : > { %677 = vmatprep.subr.bf16.mxu0 %v803_v1  ;;  %687 = vmatprep.mubr.msk.bf16.mxu1 %vm804_vm0, %v803_v1  ;;  %v762_v22 = vld [vmem:[%s925_s1] sm:$0xff]   ;;  %s623_s23 = sshll.u32 %s939_s13, 4  ;;  %vm501_vm4 = vcmask 257024   ;;  %vm518_vm5 = vcmask 519424  }
  0x12   : > { %684 = vmatpush3.bf16.msra.mxu1 %v754_v3  ;;  %s195_s29 = sadd.s32 %s708_s27, %s707_s28  ;;  %v641_v29 = vld [vmem:[%s926_s2] ss:$0 sm:$0xff]  ;;  %s204_s26 = sadd.s32 %s623_s23, %s622_s22 }
  0x13   : > { %685 = vmatprep.subr.bf16.mxu1 %v803_v1  ;;  %s621_s30 = sshll.u32 %s195_s29, 2  ;;  %s624_s27 = sshll.u32 %s204_s26, 2 }
  0x14   : > { %678 = vmatpush3.bf16.msra.mxu0 %v753_v2  ;;  %s197_s6 = scalar_lea.vmem %s924_s0, %s621_s30  ;;  %s206_s28 = scalar_lea.vmem %s927_s3, %s624_s27 }
  0x15   : > { %691 = vmatprep.subr.bf16.mxu0 %v803_v1  ;;  %v208_v5 = vld [vmem:[%s197_s6] sm:$0xf]  ;;  %v209_v6 = vld [vmem:[%s197_s6 + $0x4] sm:$0xf]  ;;  %s805_s29 = smov 32  }
  0x16   : > { %686 = vmatpush3.bf16.msra.mxu1 %v758_v4  ;;  %v633_v8 = vcombine.low %v208_v5, %v209_v6  ;;  %v760_v9 = vld [vmem:[%s197_s6 + $0x8] ss:$0 sps:$4 sm:$0x11]   ;;  %v211_v13 = vld [vmem:[%s197_s6] sm:$0xe] }
  0x17   : > { %699 = vmatprep.subr.bf16.mxu1 %v803_v1  ;;  %v296_v12 = vshll.u32 %v760_v9, 16  ;;  %v649_v17 = vcombine.low %v211_v13, %v209_v6  ;;  %v431_v23 = vrot.slane %v760_v9, 1 }
  0x18   : > { %680 = vmatmul.mubr.msk.bf16.vlgmr.msra.gmra.mxu0 %vm240_vm1, %v633_v8  ;;  %v289_v10 = vshrl.u32 %v633_v8, 16  ;;  %v291_v11 = vshll.u32 %v633_v8, 16 }
  0x19   : > { %692 = vmatpush3.bf16.msra.mxu0 %v757_v7  ;;  %695 = vmatprep.mubr.msk.bf16.mxu0 %vm804_vm0, %v803_v1  ;;  %v298_v16 = vrot.slane %v296_v12, 1  ;;  %v430_v21 = vrot.slane %v649_v17, 1 }
  0x1a   : > { %693 = vmatprep.subr.bf16.mxu0 %v803_v1  ;;  %v293_v15 = vrot.slane %v291_v11, 1 }
  0x1b   : > { %v432_v24 = vsel %vm429_vm3, %v430_v21, %v431_v23 }
  0x1c   : > { %v294_v18 = vor.u32 %v293_v15, %v289_v10 }
  0x1d   : > { %694 = vmatpush3.bf16.msra.mxu0 %v759_v14 }
  0x1e   : > { %v299_v20 = vsel %vm288_vm2, %v294_v18, %v298_v16 }
  0x1f   : > { %688 = vmatmul.mubr.msk.bf16.vlgmr.msra.gmra.mxu1 %vm240_vm1, %v299_v20 }
  0x20   : > { %700 = vmatpush3.bf16.msra.mxu1 %v761_v19  ;;  %696 = vmatmul.mubr.msk.bf16.vlgmr.msra.gmra.mxu0 %vm240_vm1, %v299_v20 }
  0x21   : > { %701 = vmatprep.subr.bf16.mxu1 %v803_v1  ;;  %703 = vmatprep.mubr.msk.bf16.mxu1 %vm804_vm0, %v803_v1 }
  0x24   : > { %702 = vmatpush3.bf16.msra.mxu1 %v762_v22 }
  0x27   : > { %704 = vmatmul.mubr.msk.bf16.vlgmr.msra.gmra.mxu1 %vm240_vm1, %v432_v24 }
  0xd8   : > { %v278_v25 = vpop.f32.mrf.mxu0 }
  0xda   : > { %v681_v26 = vpop.f32.mrf.mxu0 }
  0xdc   : > { %v281_v27 = vpop.f32.mrf.mxu0 }
  0xde   : > { %v682_v28 = vpop.f32.mrf.mxu0 }
  0xdf   : > { %v349_v30 = vpop.f32.mrf.mxu1 }
  0xe0   : > { %v350_v31 = vadd.f32 %v349_v30, %v278_v25  ;;  %v419_v32 = vpop.f32.mrf.mxu0 }
  0xe1   : > { %v689_v33 = vpop.f32.mrf.mxu1 }
  0xe2   : > { %v362_v34 = vadd.f32 %v641_v29, %v350_v31  ;;  %v697_v35 = vpop.f32.mrf.mxu0 }
  0xe3   : > { %v352_v36 = vpop.f32.mrf.mxu1 }
  0xe4   : > { %v491_v37 = vmax.f32 %v362_v34, 0.0  ;;  %v353_v38 = vadd.f32 %v352_v36, %v281_v27  ;;  %v422_v39 = vpop.f32.mrf.mxu0 }
  0xe5   : > { %v690_v40 = vpop.f32.mrf.mxu1 }
  0xe6   : > { %v659_v41 = vpack.c.bf16 %v491_v37, %v491_v37  ;;  %v363_v42 = vadd.f32 %v641_v29, %v353_v38  ;;  %v698_v43 = vpop.f32.mrf.mxu0 }
  0xe7   : > { %v482_v44 = vpop.f32.mrf.mxu1 }
  0xe8   : > { %v492_v45 = vmax.f32 %v363_v42, 0.0  ;;  %v483_v46 = vadd.f32 %v482_v44, %v419_v32  ;;  %502 = vst.msk [vmem:[%s206_s28] sm:$0xf] %vm501_vm4, %v659_v41 }
  0xe9   : > { %v705_v47 = vpop.f32.mrf.mxu1 }
  0xea   : > { %v660_v48 = vpack.c.bf16 %v492_v45, %v492_v45  ;;  %v489_v49 = vadd.f32 %v641_v29, %v483_v46 }
  0xeb   : > { %v485_v50 = vpop.f32.mrf.mxu1 }
  0xec   : > { %v486_v51 = vadd.f32 %v485_v50, %v422_v39  ;;  %v504_v52 = vmax.f32 %v489_v49, 0.0  ;;  %503 = vst.msk [vmem:[%s206_s28 + $0x4] sm:$0xf] %vm501_vm4, %v660_v48 }
  0xed   : > { %v706_v53 = vpop.f32.mrf.mxu1 }
  0xee   : > { %v490_v54 = vadd.f32 %v641_v29, %v486_v51  ;;  %v661_v55 = vpack.c.bf16 %v504_v52, %v504_v52 }
  0xf0   : > { %v505_v56 = vmax.f32 %v490_v54, 0.0  ;;  %512 = vrot.lane.b32.xlu0 %v661_v55, %s805_s29 }
  0xf2   : > { %v662_v57 = vpack.c.bf16 %v505_v56, %v505_v56 }
  0xf4   : > { %514 = vrot.lane.b32.xlu0 %v662_v57, %s805_s29 }
 0x162   : > { %v513_v58 = vpop.permute.xlu0 %512 }
 0x163   : > { %519 = vst.msk [vmem:[%s206_s28] sm:$0xf] %vm518_vm5, %v513_v58 }
 0x166   : > { %v515_v59 = vpop.permute.xlu0 %514 }
 0x167   : > { %520 = vst.msk [vmem:[%s206_s28 + $0x4] sm:$0xf] %vm518_vm5, %v515_v59 }
 0x168 PF: > { %s13_s16 = sadd.s32 1, %s801_s16   ;;  %s928_s12 = smov %s793_s14 }
 0x169   : > { %p10_p7 = scmp.ge.s32.totalorder %s13_s16, 18   ;;  %s929_s13 = smov %s797_s15 }
 0x16a   : > { %s930_s14 = smov %s933_s17  ;;  %s931_s15 = smov %s937_s18 }
 0x16b   :  { %12 = sbr.rel (!%p10_p7) target bundleno = 3 (0x3), region = 65 }

// kernel: fire_deconv_forward.5
= control target key start
LH: loop header
LB: loop body
LE: loop exit
PB: predicated region body
PF: predicated region fallthrough
CT: control target
= control target key end

     0   :  { %12 = vsyncpa [#allocation3], 0  ;;  %s2273_s0 = inlined_call_operand.vmem [shape: bf16[2,10,34,32], index: 0, kind: input, shape index: {}, may-alias: {0,1,2}]   ;;  %s2274_s1 = inlined_call_operand.vmem [shape: bf16[2,10,34,32], index: 1, kind: input, shape index: {}, may-alias: {0,1,2}]   ;;  %s2275_s2 = inlined_call_operand.vmem [shape: bf16[2,10,34,32], index: 2, kind: input, shape index: {}, may-alias: {0,1,2}]   ;;  %s2276_s3 = inlined_call_operand.vmem [shape: bf16[3,3,32,64], index: 3, kind: input, shape index: {}]   ;;  %s2277_s4 = inlined_call_operand.vmem [shape: bf16[32,64], index: 4, kind: input, shape index: {}]   ;;  %s2278_s5 = inlined_call_operand.vmem [shape: f32[1,64], index: 5, kind: input, shape index: {}]   ;;  %s2279_s6 = inlined_call_operand.vmem [shape: f32[1,64], index: 6, kind: input, shape index: {}]   ;;  %s2280_s7 = inlined_call_operand.hbm [shape: f32[2,8,32,128], index: 7, kind: output, shape index: {}]  }
   0x1   :  { %14 = vsyncpa [#allocation3 + $0x1], 0  ;;  %s1970_s24 = smov 0   ;;  %s1972_s25 = smov 0  }
   0x2   :  { %s1974_s26 = smov 0   ;;  %s1976_s27 = smov 0  }
   0x3   :  { %s1978_s28 = smov 0   ;;  %s1980_s29 = smov 0  }
   0x4   :  { %s1982_s30 = smov 0   ;;  %s1984_s8 = smov 0  }
   0x5 LB: > { %s1493_s9 = sadd.s32 4294967295, %s1924_s8   ;;  %s1494_s10 = sadd.s32 4294967294, %s1924_s8   ;;  %s1924_s8 = sphi %s1984_s8, %s20_s8   ;;  %s1920_s30 = sphi %s1982_s30, %s2295_s30   ;;  %s1916_s29 = sphi %s1980_s29, %s2294_s29   ;;  %s1912_s28 = sphi %s1978_s28, %s2293_s28   ;;  %s1908_s27 = sphi %s1976_s27, %s2292_s27   ;;  %s1904_s26 = sphi %s1974_s26, %s2291_s26   ;;  %s1900_s25 = sphi %s1972_s25, %s2290_s25   ;;  %s1896_s24 = sphi %s1970_s24, %s2289_s24  }
   0x6   : > { %s29_s11 = sadd.s32 1, %s1916_s29  ;;  %s32_s12 = sadd.s32 1, %s1920_s30 }
   0x7   : > { %p30_p0 = scmp.ge.s32.totalorder %s29_s11, 8  ;;  %p223_p1 = scmp.ne.s32.totalorder %s1904_s26, %s1900_s25 }
   0x8   : > { %p224_p2 = scmp.eq.s32.totalorder %s1493_s9, 15  ;;  %p229_p5 = scmp.ne.s32.totalorder %s1900_s25, %s1896_s24 }
   0x9   : > { %s2297_s11 = smov (%p30_p0, %s29_s11), 0  ;;  %s2299_s12 = smov (!%p30_p0, %s32_s12), %s1920_s30 }
   0xa   : > { %2283 = sst [smem:[#allocation5_spill]] %s2297_s11  ;;  %s209_s13 = ssub.s32 %s1916_s29, %s2297_s11 }
   0xb   : > { %p2021_p3 = por %p224_p2, %p223_p1  ;;  %p34_p4 = scmp.ge.s32.totalorder %s2299_s12, 2 }
   0xc   : > { %p230_p6 = scmp.eq.s32.totalorder %s1494_s10, 15  ;;  %p1497_p7 = scmp.ge.s32.totalorder %s1924_s8, 1 }
   0xd   : > { %s2301_s12 = smov (%p34_p4, %s2299_s12), 0  ;;  %p300_p9 = scmp.lt.s32.totalorder %s1924_s8, 17 }
   0xe   : > { %2285 = sst [smem:[#allocation6_spill]] %s2301_s12  ;;  %p2030_p8 = por %p230_p6, %p229_p5 }
   0xf   : > { %s208_s16 = ssub.s32 %s1920_s30, %s2301_s12  ;;  %s213_s17 = sadd.s32 1, %s1904_s26 }
  0x10   : > { %s210_s18 = sor.u32 %s209_s13, %s208_s16  ;;  %p301_p10 = pnand %p1497_p7, %p300_p9 }
  0x11   : > { %p211_p11 = scmp.eq.s32.totalorder %s210_s18, 0  ;;  %p356_p12 = scmp.lt.s32.totalorder (!%p301_p10), %s1912_s28, 1 }
  0x12   : > { %304 = sbr.rel (%p301_p10) target bundleno = 408 (0x198), region = 48  ;;  %p358_p13 = scmp.lt.s32.totalorder (!%p301_p10), %s1908_s27, 9 }
  0x13   : > { %s2039_s19 = scalar_select %p211_p11, %s1904_s26, %s213_s17  }
  0x14   : > { %s365_s21 = sadd.s32 (!%p301_p10), 1, %s1908_s27  ;;  %s376_s10 = sadd.s32 (!%p301_p10), 2, %s1908_s27 }
  0x15   : > { %p368_p0 = scmp.lt.s32.totalorder (!%p301_p10), %s365_s21, 9  ;;  %p379_p1 = scmp.lt.s32.totalorder (!%p301_p10), %s376_s10, 9 }
  0x17   : > { %v1796_v0 = vld [vmem:[%s2276_s3 + $0x18] sm:$0xff]   ;;  %v1797_v1 = vld [vmem:[%s2276_s3 + $0x8] sm:$0xff]   ;;  %v1798_v2 = vld [vmem:[%s2276_s3 + $0x10] sm:$0xff]   ;;  %s357_s13 = scalar_select %p356_p12, %s1912_s28, 1  ;;  %vm415_vm0 = vsmask.f32 7424 }
  0x18   : > { %1638 = vmatprep.subr.bf16.mxu0 %v1796_v0  ;;  %1646 = vmatprep.subr.bf16.mxu1 %v1797_v1  ;;  %v1799_v3 = vld [vmem:[%s2276_s3] sm:$0xff]   ;;  %s359_s18 = scalar_select %p358_p13, %s1908_s27, 9  ;;  %v2063_v4 = vld [vmem:[%s2276_s3 + $0x28] sm:$0xff]   ;;  %v1804_v5 = vld [vmem:[%s2276_s3 + $0x38] sm:$0xff]   ;;  %vm448_vm1 = vcmask 261120   ;;  %vm578_vm2 = vcmask 1046528  }
  0x19   : > { %1639 = vmatpush3.bf16.msra.mxu0 %v1796_v0  ;;  %1647 = vmatpush3.bf16.msra.mxu1 %v1797_v1  ;;  %s2057_s20 = smul.u32 50, %s357_s13  ;;  %s2303_s21 = smov (!%p368_p0, %s365_s21), 9  ;;  %v1806_v12 = vld [vmem:[%s2276_s3 + $0x30] sm:$0xff]   ;;  %v1811_v23 = vld [vmem:[%s2276_s3 + $0x58] sm:$0xff]   ;;  %v1805_v26 = vld [vmem:[%s2276_s3 + $0x20] sm:$0xff]   ;;  %vm1320_vm3 = vcmask 523264  }
  0x1a   : > { %1640 = vmatprep.subr.bf16.mxu0 %v1798_v2  ;;  %1648 = vmatprep.subr.bf16.mxu1 %v1799_v3  ;;  %s1718_s9 = smul.u32 5, %s359_s18  ;;  %s2305_s10 = smov (!%p379_p1, %s376_s10), 9  ;;  %v1813_v33 = vld [vmem:[%s2276_s3 + $0x50] sm:$0xff]   ;;  %v1809_v36 = vld [vmem:[%s2276_s3 + $0x48] sm:$0xff]   ;;  %v1819_v49 = vld [vmem:[%s2276_s3 + $0x78] sm:$0xff]   ;;  %vm1345_vm4 = vcmask 1048064  }
  0x1b   : > { %s1720_s11 = smul.u32 5, %s2303_s21  ;;  %v1812_v56 = vld [vmem:[%s2276_s3 + $0x40] sm:$0xff]   ;;  %v1821_v60 = vld [vmem:[%s2276_s3 + $0x70] sm:$0xff]  }
  0x1c   : > { %s362_s16 = sadd.s32 %s2057_s20, %s1718_s9 }
  0x1d   : > { %1641 = vmatpush3.bf16.msra.mxu0 %v1798_v2  ;;  %1649 = vmatpush3.bf16.msra.mxu1 %v1799_v3  ;;  %s1499_s13 = sshll.u32 %s362_s16, 2  ;;  %s372_s9 = sadd.s32 %s1720_s11, %s2057_s20  ;;  %v1817_v3 = vld [vmem:[%s2276_s3 + $0x68] sm:$0xff]  }
  0x1e   : > { %1654 = vmatprep.subr.bf16.mxu0 %v2063_v4  ;;  %s364_s23 = scalar_lea.vmem %s2273_s0, %s1499_s13  ;;  %1662 = vmatprep.subr.bf16.mxu1 %v1804_v5  ;;  %s1500_s21 = sshll.u32 %s372_s9, 2 }
  0x1f   : > { %v388_v6 = vld [vmem:[%s364_s23] sm:$0xf]  ;;  %v389_v7 = vld [vmem:[%s364_s23 + $0x4] sm:$0xf]  ;;  %v2074_v8 = vld [vmem:[%s364_s23 + $0x8] sm:$0xff]   ;;  %s1721_s16 = smul.u32 5, %s2305_s10  ;;  %s2092_s22 = scalar_lea.vmem %s2274_s1, %s1500_s21 }
  0x20   : > { %v1506_v9 = vcombine.low %v388_v6, %v389_v7  ;;  %v424_v10 = vshll.u32 %v2074_v8, 16  ;;  %v428_v11 = vshrl.u32 %v2074_v8, 16  ;;  %v1803_v15 = vld [vmem:[%s364_s23 + $0x10] ss:$0 sps:$4 sm:$0x11]   ;;  %v580_v18 = vrot.slane %v2074_v8, 1 }
  0x21   : > { %v569_v17 = vld [vmem:[%s364_s23] sm:$0xe]  ;;  %v432_v20 = vshll.u32 %v1803_v15, 16  ;;  %s2102_s18 = sadd.s32 %s1721_s16, %s2057_s20  ;;  %v1810_v32 = vld [vmem:[%s2092_s22 + $0x8] sm:$0xff]   ;;  %v746_v35 = vld [vmem:[%s2092_s22 + $0x4] sm:$0xf] }
  0x22   : > { %v417_v13 = vshrl.u32 %v1506_v9, 16  ;;  %v419_v14 = vshll.u32 %v1506_v9, 16  ;;  %1650 = vmatprep.mubr.msk.bf16.mxu1 %vm448_vm1, %v1506_v9  ;;  %v426_v16 = vrot.slane %v424_v10, 1  ;;  %v1521_v21 = vcombine.low %v569_v17, %v389_v7  ;;  %v1808_v28 = vld [vmem:[%s2092_s22] sm:$0xff]   ;;  %v1815_v38 = vld [vmem:[%s2092_s22 + $0x8] sm:$0xff]   ;;  %s1501_s13 = sshll.u32 %s2102_s18, 2 }
  0x23   : > { %1651 = vmatmul.mubr.msk.bf16.vlgmr.msra.gmra.mxu1 %vm448_vm1, %v2074_v8  ;;  %v434_v25 = vrot.slane %v432_v20, 1  ;;  %v745_v34 = vld [vmem:[%s2092_s22] sm:$0xf]  ;;  %v582_v40 = vrot.slane %v1803_v15, 1  ;;  %v776_v44 = vshll.u32 %v1815_v38, 16  ;;  %v780_v45 = vshrl.u32 %v1815_v38, 16  ;;  %s2132_s12 = scalar_lea.vmem %s2275_s2, %s1501_s13 }
  0x24   : > { %v421_v19 = vrot.slane %v419_v14, 1  ;;  %1663 = vmatpush3.bf16.msra.mxu1 %v1804_v5  ;;  %v430_v22 = vor.u32 %v428_v11, %v426_v16  ;;  %v579_v27 = vrot.slane %v1521_v21, 1  ;;  %1666 = vmatprep.mubr.msk.bf16.mxu1 %vm448_vm1, %v1808_v28  ;;  %v1540_v37 = vcombine.low %v745_v34, %v746_v35  ;;  %v859_v39 = vld [vmem:[%s2092_s22] sm:$0xe]  ;;  %v1035_v62 = vld [vmem:[%s2132_s12 + $0x4] sm:$0xf] }
  0x25   : > { %1664 = vmatprep.subr.bf16.mxu1 %v1806_v12  ;;  %v1551_v41 = vcombine.low %v859_v39, %v746_v35  ;;  %v869_v47 = vrot.slane %v1815_v38, 1  ;;  %v1818_v48 = vld [vmem:[%s2092_s22 + $0x10] ss:$0 sps:$4 sm:$0x11]   ;;  %v778_v51 = vrot.slane %v776_v44, 1  ;;  %v583_v52 = vsel %vm578_vm2, %v580_v18, %v582_v40  ;;  %v1824_v2 = vld [vmem:[%s2132_s12 + $0x8] sm:$0xff]  }
  0x26   : > { %v422_v24 = vor.u32 %v421_v19, %v417_v13  ;;  %v435_v30 = vsel %vm415_vm0, %v430_v22, %v434_v25  ;;  %v581_v31 = vsel %vm578_vm2, %v579_v27, %v580_v18  ;;  %v769_v42 = vshrl.u32 %v1540_v37, 16  ;;  %v1034_v61 = vld [vmem:[%s2132_s12] sm:$0xf]  ;;  %v1827_v13 = vld [vmem:[%s2132_s12 + $0x10] ss:$0 sps:$4 sm:$0x11]  }
  0x27   : > { %v771_v43 = vshll.u32 %v1540_v37, 16  ;;  %v868_v46 = vrot.slane %v1551_v41, 1  ;;  %v784_v54 = vshll.u32 %v1818_v48, 16  ;;  %v871_v55 = vrot.slane %v1818_v48, 1  ;;  %v1820_v8 = vld [vmem:[%s2276_s3 + $0x60] sm:$0xff]   ;;  %v1830_v19 = vld [vmem:[%s2277_s4 + $0x8] sm:$0xff]  }
  0x28   : > { %v427_v29 = vsel %vm415_vm0, %v422_v24, %v426_v16  ;;  %1665 = vmatpush3.bf16.msra.mxu1 %v1806_v12  ;;  %v782_v63 = vor.u32 %v780_v45, %v778_v51  ;;  %v1570_v1 = vcombine.low %v1034_v61, %v1035_v62  ;;  %v1065_v6 = vshll.u32 %v1824_v2, 16  ;;  %v1822_v10 = vld [vmem:[%s2132_s12] sm:$0xff]   ;;  %v1825_v22 = vld [vmem:[%s2276_s3 + $0x88] sm:$0xff]   ;;  %s1926_s22 = smov 64   ;;  %s1593_s18 = sshll.u32 %s1908_s27, 2 }
  0x29   : > { %1642 = vmatprep.mubr.msk.bf16.mxu0 %vm448_vm1, %v427_v29  ;;  %1678 = vmatprep.subr.bf16.mxu1 %v1811_v23  ;;  %v773_v50 = vrot.slane %v771_v43, 1  ;;  %v870_v53 = vsel %vm578_vm2, %v868_v46, %v869_v47  ;;  %v872_v58 = vsel %vm578_vm2, %v869_v47, %v871_v55  ;;  %v786_v0 = vrot.slane %v784_v54, 1  ;;  %v1148_v14 = vld [vmem:[%s2132_s12] sm:$0xe]  ;;  %v1826_v27 = vld [vmem:[%s2132_s12 + $0x8] sm:$0xff]   ;;  %s353_s12 = sand.u32 1, %s1900_s25  }
  0x2a   : > { %1643 = vmatmul.mubr.msk.bf16.vlgmr.msra.gmra.mxu0 %vm448_vm1, %v435_v30  ;;  %v1060_v5 = vshll.u32 %v1570_v1, 16  ;;  %v1069_v7 = vshrl.u32 %v1824_v2, 16  ;;  %v1067_v12 = vrot.slane %v1065_v6, 1  ;;  %v1073_v17 = vshll.u32 %v1827_v13, 16  ;;  %v1831_v25 = vld [vmem:[%s2277_s4] sm:$0xff]   ;;  %s1498_s17 = sshll.u32 %s353_s12, 5 }
  0x2b   : > { %1655 = vmatpush3.bf16.msra.mxu0 %v2063_v4  ;;  %1658 = vmatprep.mubr.msk.bf16.mxu0 %vm448_vm1, %v581_v31  ;;  %v774_v57 = vor.u32 %v773_v50, %v769_v42  ;;  %v1058_v4 = vshrl.u32 %v1570_v1, 16  ;;  %v787_v9 = vsel %vm415_vm0, %v782_v63, %v786_v0  ;;  %v1581_v18 = vcombine.low %v1148_v14, %v1035_v62  ;;  %v1828_v28 = vld [vmem:[%s2276_s3 + $0x80] sm:$0xff]   ;;  %s2196_s10 = scalar_lea.vmem [#allocation2], %s1498_s17  ;;  %s1594_s9 = sshll.u32 %s1912_s28, 5 }
  0x2c   : > { %1656 = vmatprep.subr.bf16.mxu0 %v1805_v26  ;;  %1667 = vmatmul.mubr.msk.bf16.vlgmr.msra.gmra.mxu1 %vm448_vm1, %v1810_v32  ;;  %v1062_v11 = vrot.slane %v1060_v5, 1  ;;  %v1071_v16 = vor.u32 %v1069_v7, %v1067_v12  ;;  %v1075_v21 = vrot.slane %v1073_v17, 1  ;;  %v1158_v24 = vrot.slane %v1824_v2, 1  ;;  %v1587_v17 = vld [vmem:[%s2279_s6] ss:$0 sm:$0xff]  ;;  %s1363_s21 = sadd.s32 %s1594_s9, %s1593_s18  ;;  %s1366_s16 = sshll.u32 %s2196_s10, 4  ;;  %s2216_s16 = int_to_ptr.vmem [resolvable:$true] %s1366_s16 }
  0x2d   : > { %1679 = vmatpush3.bf16.msra.mxu1 %v1811_v23  ;;  %1682 = vmatprep.mubr.msk.bf16.mxu1 %vm448_vm1, %v870_v53  ;;  %v779_v59 = vsel %vm415_vm0, %v774_v57, %v778_v51  ;;  %v1157_v23 = vrot.slane %v1581_v18, 1  ;;  %v1160_v30 = vrot.slane %v1827_v13, 1  ;;  %s1595_s20 = sshll.u32 %s1363_s21, 7  ;;  %s2222_s27 = scalar_lea.sflag [#allocation3], %s353_s12 }
  0x2e   : > { %1680 = vmatprep.subr.bf16.mxu1 %v1813_v33  ;;  %v1063_v15 = vor.u32 %v1062_v11, %v1058_v4  ;;  %s2214_s23 = scalar_lea.hbm %s2280_s7, %s1595_s20  ;;  %s1832_s28 = scalar_lea.vmem %s2216_s16, 512 }
  0x2f   : > { %1657 = vmatpush3.bf16.msra.mxu0 %v1805_v26  ;;  %v1076_v26 = vsel %vm415_vm0, %v1071_v16, %v1075_v21  ;;  %v1159_v29 = vsel %vm578_vm2, %v1157_v23, %v1158_v24  ;;  %v1161_v31 = vsel %vm578_vm2, %v1158_v24, %v1160_v30  ;;  %p1833_p2 = scmp.ne.s32.totalorder %s2216_s16, %s1832_s28  ;;  %s1927_s11 = smov [#allocation2]  }
  0x30   : > { %1670 = vmatprep.subr.bf16.mxu0 %v1809_v36  ;;  %v1068_v20 = vsel %vm415_vm0, %v1063_v15, %v1067_v12 }
  0x31   : > { %1681 = vmatpush3.bf16.msra.mxu1 %v1813_v33  ;;  %p1834_p4 = pnand %p1833_p2, %p2021_p3 }
  0x32   : > { %1659 = vmatmul.mubr.msk.bf16.vlgmr.msra.gmra.mxu0 %vm448_vm1, %v583_v52  ;;  %1694 = vmatprep.subr.bf16.mxu1 %v1819_v49 }
  0x33   : > { %1671 = vmatpush3.bf16.msra.mxu0 %v1809_v36  ;;  %1674 = vmatprep.mubr.msk.bf16.mxu0 %vm448_vm1, %v779_v59  ;;  %p1835_p5 = pneg %p1834_p4 }
  0x34   : > { %1672 = vmatprep.subr.bf16.mxu0 %v1812_v56  ;;  %1683 = vmatmul.mubr.msk.bf16.vlgmr.msra.gmra.mxu1 %vm448_vm1, %v872_v58 }
  0x35   : > { %1695 = vmatpush3.bf16.msra.mxu1 %v1819_v49  ;;  %1698 = vmatprep.mubr.msk.bf16.mxu1 %vm448_vm1, %v1068_v20 }
  0x36   : > { %1696 = vmatprep.subr.bf16.mxu1 %v1821_v60 }
  0x37   : > { %1673 = vmatpush3.bf16.msra.mxu0 %v1812_v56 }
  0x38   : > { %1686 = vmatprep.subr.bf16.mxu0 %v1817_v3 }
  0x39   : > { %1697 = vmatpush3.bf16.msra.mxu1 %v1821_v60 }
  0x3a   : > { %1675 = vmatmul.mubr.msk.bf16.vlgmr.msra.gmra.mxu0 %vm448_vm1, %v787_v9  ;;  %1710 = vmatprep.subr.bf16.mxu1 %v1830_v19 }
  0x3b   : > { %1687 = vmatpush3.bf16.msra.mxu0 %v1817_v3  ;;  %1690 = vmatprep.mubr.msk.bf16.mxu0 %vm448_vm1, %v1822_v10 }
  0x3c   : > { %1688 = vmatprep.subr.bf16.mxu0 %v1820_v8  ;;  %1699 = vmatmul.mubr.msk.bf16.vlgmr.msra.gmra.mxu1 %vm448_vm1, %v1076_v26 }
  0x3d   : > { %1711 = vmatpush3.bf16.msra.mxu1 %v1830_v19  ;;  %1714 = vmatprep.mubr.msk.bf16.mxu1 %vm448_vm1, %v779_v59 }
  0x3e   : > { %1712 = vmatprep.subr.bf16.mxu1 %v1831_v25 }
  0x3f   : > { %1689 = vmatpush3.bf16.msra.mxu0 %v1820_v8 }
  0x40   : > { %1702 = vmatprep.subr.bf16.mxu0 %v1825_v22 }
  0x41   : > { %1713 = vmatpush3.bf16.msra.mxu1 %v1831_v25 }
  0x42   : > { %1691 = vmatmul.mubr.msk.bf16.vlgmr.msra.gmra.mxu0 %vm448_vm1, %v1826_v27 }
  0x43   : > { %1703 = vmatpush3.bf16.msra.mxu0 %v1825_v22  ;;  %1706 = vmatprep.mubr.msk.bf16.mxu0 %vm448_vm1, %v1159_v29  ;;  %v1586_v29 = vld [vmem:[%s2278_s5] ss:$0 sm:$0xff] }
  0x44   : > { %1704 = vmatprep.subr.bf16.mxu0 %v1828_v28  ;;  %1715 = vmatmul.mubr.msk.bf16.vlgmr.msra.gmra.mxu1 %vm448_vm1, %v787_v9 }
  0x47   : > { %1705 = vmatpush3.bf16.msra.mxu0 %v1828_v28 }
  0x4a   : > { %1707 = vmatmul.mubr.msk.bf16.vlgmr.msra.gmra.mxu0 %vm448_vm1, %v1161_v31 }
  0xe3   : > { %v1652_v32 = vpop.f32.mrf.mxu1 }
  0xe5   : > { %v554_v33 = vpop.f32.mrf.mxu1 }
  0xe7   : > { %v1653_v34 = vpop.f32.mrf.mxu1 }
  0xe9   : > { %v557_v35 = vpop.f32.mrf.mxu1 }
  0xea   : > { %v1644_v36 = vpop.f32.mrf.mxu0 }
  0xeb   : > { %v563_v49 = vadd.f32 %v1652_v32, %v1644_v36 }
  0xec   : > { %v489_v37 = vpop.f32.mrf.mxu0  ;;  %v1668_v38 = vpop.f32.mrf.mxu1 }
  0xed   : > { %v555_v52 = vadd.f32 %v554_v33, %v489_v37 }
  0xee   : > { %v1645_v39 = vpop.f32.mrf.mxu0  ;;  %v726_v40 = vpop.f32.mrf.mxu1 }
  0xef   : > { %v566_v56 = vadd.f32 %v1653_v34, %v1645_v39 }
  0xf0   : > { %v492_v41 = vpop.f32.mrf.mxu0  ;;  %v1669_v42 = vpop.f32.mrf.mxu1 }
  0xf1   : > { %v558_v59 = vadd.f32 %v557_v35, %v492_v41 }
  0xf2   : > { %v1660_v43 = vpop.f32.mrf.mxu0  ;;  %v729_v44 = vpop.f32.mrf.mxu1 }
  0xf3   : > { %v653_v53 = vadd.f32 %v1660_v43, %v563_v49 }
  0xf4   : > { %v636_v45 = vpop.f32.mrf.mxu0  ;;  %v1684_v46 = vpop.f32.mrf.mxu1 }
  0xf5   : > { %v651_v57 = vadd.f32 %v636_v45, %v555_v52  ;;  %v743_v60 = vadd.f32 %v1668_v38, %v653_v53 }
  0xf6   : > { %v1661_v47 = vpop.f32.mrf.mxu0  ;;  %v925_v48 = vpop.f32.mrf.mxu1 }
  0xf7   : > { %v654_v61 = vadd.f32 %v1661_v47, %v566_v56  ;;  %v741_v0 = vadd.f32 %v726_v40, %v651_v57 }
  0xf8   : > { %v639_v50 = vpop.f32.mrf.mxu0  ;;  %v1685_v51 = vpop.f32.mrf.mxu1 }
  0xf9   : > { %v652_v1 = vadd.f32 %v639_v50, %v558_v59  ;;  %v744_v5 = vadd.f32 %v1669_v42, %v654_v61 }
  0xfa   : > { %v1676_v54 = vpop.f32.mrf.mxu0  ;;  %v928_v55 = vpop.f32.mrf.mxu1 }
  0xfb   : > { %v857_v2 = vadd.f32 %v1676_v54, %v743_v60  ;;  %v742_v9 = vadd.f32 %v729_v44, %v652_v1 }
  0xfc   : > { %v840_v58 = vpop.f32.mrf.mxu0  ;;  %v1700_v63 = vpop.f32.mrf.mxu1 }
  0xfd   : > { %v855_v6 = vadd.f32 %v840_v58, %v741_v0  ;;  %v942_v10 = vadd.f32 %v1684_v46, %v857_v2 }
  0xfe   : > { %v1677_v62 = vpop.f32.mrf.mxu0  ;;  %v1129_v4 = vpop.f32.mrf.mxu1 }
  0xff   : > { %v858_v11 = vadd.f32 %v1677_v62, %v744_v5  ;;  %v940_v13 = vadd.f32 %v925_v48, %v855_v6 }
 0x100   : > { %v843_v3 = vpop.f32.mrf.mxu0  ;;  %v1701_v8 = vpop.f32.mrf.mxu1 }
 0x101   : > { %v856_v14 = vadd.f32 %v843_v3, %v742_v9  ;;  %v943_v19 = vadd.f32 %v1685_v51, %v858_v11 }
 0x102   : > { %v1692_v7 = vpop.f32.mrf.mxu0  ;;  %v1132_v16 = vpop.f32.mrf.mxu1 }
 0x103   : > { %v1032_v15 = vadd.f32 %v1692_v7, %v942_v10  ;;  %v941_v24 = vadd.f32 %v928_v55, %v856_v14 }
 0x104   : > { %v1015_v12 = vpop.f32.mrf.mxu0  ;;  %v1716_v21 = vpop.f32.mrf.mxu1 }
 0x105   : > { %v1030_v20 = vadd.f32 %v1015_v12, %v940_v13  ;;  %v1310_v23 = vadd.f32 %v1716_v21, %v1587_v17  ;;  %v1146_v25 = vadd.f32 %v1700_v63, %v1032_v15 }
 0x106   : > { %v1693_v18 = vpop.f32.mrf.mxu0  ;;  %v1301_v27 = vpop.f32.mrf.mxu1 }
 0x107   : > { %v1033_v26 = vadd.f32 %v1693_v18, %v943_v19  ;;  %v1318_v30 = vmax.f32 %v1310_v23, 0.0  ;;  %v1302_v31 = vadd.f32 %v1587_v17, %v1301_v27  ;;  %v1144_v32 = vadd.f32 %v1129_v4, %v1030_v20 }
 0x108   : > { %v1018_v22 = vpop.f32.mrf.mxu0  ;;  %v1717_v35 = vpop.f32.mrf.mxu1 }
 0x109   : > { %v1031_v33 = vadd.f32 %v1018_v22, %v941_v24  ;;  %1323 = vst.msk [vmem:[%s2196_s10 + $0x10] sm:$0xff] %vm1320_vm3, %v1318_v30  ;;  %v1316_v37 = vmax.f32 %v1302_v31, 0.0  ;;  %v1313_v38 = vadd.f32 %v1717_v35, %v1587_v17  ;;  %v1147_v39 = vadd.f32 %v1701_v8, %v1033_v26 }
 0x10a   : > { %v1708_v28 = vpop.f32.mrf.mxu0  ;;  %v1304_v42 = vpop.f32.mrf.mxu1 }
 0x10b   : > { %v1231_v34 = vadd.f32 %v1708_v28, %v1146_v25  ;;  %1321 = vst.msk [vmem:[%s2196_s10] sm:$0xff] %vm1320_vm3, %v1316_v37  ;;  %v1319_v44 = vmax.f32 %v1313_v38, 0.0  ;;  %v1305_v45 = vadd.f32 %v1587_v17, %v1304_v42  ;;  %v1145_v46 = vadd.f32 %v1132_v16, %v1031_v33 }
 0x10c   : > { %v1214_v36 = vpop.f32.mrf.mxu0 }
 0x10d   : > { %v1229_v40 = vadd.f32 %v1214_v36, %v1144_v32  ;;  %v1242_v41 = vadd.f32 %v1586_v29, %v1231_v34  ;;  %1324 = vst.msk [vmem:[%s2196_s10 + $0x18] sm:$0xff] %vm1320_vm3, %v1319_v44  ;;  %v1317_v51 = vmax.f32 %v1305_v45, 0.0 }
 0x10e   : > { %v1709_v43 = vpop.f32.mrf.mxu0 }
 0x10f   : > { %v1232_v47 = vadd.f32 %v1709_v43, %v1147_v39  ;;  %v1327_v48 = vmax.f32 %v1242_v41, 0.0  ;;  %v1240_v49 = vadd.f32 %v1586_v29, %v1229_v40  ;;  %1322 = vst.msk [vmem:[%s2196_s10 + $0x8] sm:$0xff] %vm1320_vm3, %v1317_v51 }
 0x110   : > { %v1217_v50 = vpop.f32.mrf.mxu0 }
 0x111   : > { %v1243_v52 = vadd.f32 %v1586_v29, %v1232_v47  ;;  %v1230_v53 = vadd.f32 %v1217_v50, %v1145_v46  ;;  %1337 = vrot.lane.b32.xlu1 %v1327_v48, %s1926_s22  ;;  %v1325_v54 = vmax.f32 %v1240_v49, 0.0 }
 0x113   : > { %v1328_v55 = vmax.f32 %v1243_v52, 0.0  ;;  %v1241_v56 = vadd.f32 %v1586_v29, %v1230_v53  ;;  %1333 = vrot.lane.b32.xlu0 %v1325_v54, %s1926_s22 }
 0x115   : > { %v1326_v57 = vmax.f32 %v1241_v56, 0.0  ;;  %1339 = vrot.lane.b32.xlu1 %v1328_v55, %s1926_s22 }
 0x117   : > { %1335 = vrot.lane.b32.xlu0 %v1326_v57, %s1926_s22  ;;  %s1836_s22 = sshll.u32 %s1927_s11, 4  ;;  %s1837_s22 = int_to_ptr.vmem [resolvable:$false] %s1836_s22 }
 0x118   : > { %s1838_s18 = scalar_lea.vmem %s1837_s22, 1024  ;;  %p1839_p6 = scmp.lt.s32.totalorder %s2216_s16, %s1837_s22 }
 0x119   : > { %p1840_p7 = scmp.lt.s32.totalorder %s1838_s18, %s1832_s28 }
 0x11b   : > { %p1841_p9 = por %p1840_p7, %p1839_p6 }
 0x11d   : > { %p1842_p10 = pnand %p1841_p9, %p1835_p5 }
 0x183   : > { %v1338_v58 = vpop.permute.xlu1 %1337 }
 0x184   : > { %1348 = vst.msk [vmem:[%s2196_s10 + $0x10] sm:$0xff] %vm1345_vm4, %v1338_v58 }
 0x185   : > { %v1334_v59 = vpop.permute.xlu0 %1333 }
 0x186   : > { %1346 = vst.msk [vmem:[%s2196_s10] sm:$0xff] %vm1345_vm4, %v1334_v59 }
 0x187   : > { %v1340_v60 = vpop.permute.xlu1 %1339 }
 0x188   : > { %1349 = vst.msk [vmem:[%s2196_s10 + $0x18] sm:$0xff] %vm1345_vm4, %v1340_v60 }
 0x189   : > { %v1336_v61 = vpop.permute.xlu0 %1335 }
 0x18a   : > { %1347 = vst.msk [vmem:[%s2196_s10 + $0x8] sm:$0xff] %vm1345_vm4, %v1336_v61 }
 0x18b   : > { %1845 = shalt.err (!%p1842_p10)
}
 0x18c   : > { %s1846_s12 = scalar_lea.hbm %s2214_s23, 512  ;;  %s1850_s21 = scalar_lea.hbm %s2280_s7, 8192 }
 0x18d   : > { %p1847_p11 = scmp.ne.s32.totalorder %s2214_s23, %s1846_s12  ;;  %p1851_p0 = scmp.lt.s32.totalorder %s2214_s23, %s2280_s7 }
 0x18e   : > { %p1852_p1 = scmp.lt.s32.totalorder %s1850_s21, %s1846_s12 }
 0x18f   : > { %p1848_p12 = pnand %p1847_p11, %p2021_p3 }
 0x190   : > { %p1853_p2 = por %p1852_p1, %p1851_p0 }
 0x191   : > { %p1849_p13 = pneg %p1848_p12 }
 0x193   : > { %p1854_p4 = pnand %p1853_p2, %p1849_p13 }
 0x195   : > { %1857 = shalt.err (!%p1854_p4)
}
 0x196   : > { %s1928_s17 = smov 128   ;;  %s1929_s28 = smov 8  }
 0x197   : > { %1722 = dma.vmem_to_hbm [thread:$0]  (%p2021_p3), %s2216_s16, 512, %s2214_s23, %s2222_s27, %s1928_s17, %s1928_s17, %s1929_s28  }
 0x198 PF: > { %p1728_p5 = scmp.ge.s32.totalorder %s1924_s8, 2  ;;  %s1381_s11 = sand.u32 1, %s1896_s24  }
 0x199   : > { %s1382_s22 = scalar_lea.sflag [#allocation3], %s1381_s11 }
 0x19a   : > { %p1725_p6 = pnand %p1728_p5, %p2030_p8 }
 0x19c   : > { %p1726_p7 = pneg %p1725_p6 }
 0x19e   : > { %1891 = dma.done.wait (%p1726_p7), %s1382_s22, 512  }
 0x19f   : > { %1893 = vsyncadd (%p1726_p7), %s1382_s22, 4294966784  ;;  %s20_s8 = sadd.s32 1, %s1924_s8   ;;  %s2287_s14 = sld [smem:[#allocation5_spill]] }
 0x1a0   : > { %p17_p9 = scmp.ge.s32.totalorder %s20_s8, 18   ;;  %s2288_s16 = sld [smem:[#allocation6_spill]] }
 0x1a1   : > { %s2289_s24 = smov %s1900_s25  ;;  %s2290_s25 = smov %s1904_s26 }
 0x1a2   : > { %s2291_s26 = smov %s2039_s19  ;;  %s2292_s27 = smov %s1916_s29 }
 0x1a3   : > { %s2293_s28 = smov %s1920_s30  ;;  %19 = sbr.rel (!%p17_p9) target bundleno = 5 (0x5), region = 97 }
 0x1a5   : > { %s2294_s29 = smov %s2287_s14 }
 0x1a6   : > { %s2295_s30 = smov %s2288_s16 }
 0x1a8   :  { %1387 = vsyncpa [#allocation3], 1 }
 0x1a9   :  { %1389 = vsyncpa [#allocation3 + $0x1], 1 }

</bundles_post_ra>
